<compile_context>
chip_gen: v7x
topology: tpu7x:2x2x1
jax: 0.10.0
libtpu: 0.0.40
codegen_flags: <defaults>
</compile_context>

<pallas_src>
import functools

import jax
import jax.numpy as jnp
from jax.experimental import pallas as pl
from jax.experimental.pallas import tpu as pltpu


def _round_up(x, m):
    return ((x + m - 1) // m) * m


def _rnn_recurrent_kernel(xproj_ref, whh_ref, h0_ref, out_ref, h_scratch, *, t_chunk):
    """grid = (batch_tiles, time_chunks).

    The time axis (grid axis 1) is sequential; the hidden state lives in VMEM scratch
    and persists across time chunks of a given batch tile.
    """
    t = pl.program_id(1)

    @pl.when(t == 0)
    def _():
        h_scratch[...] = h0_ref[...]

    w = whh_ref[...]          # (H_PAD, H_PAD) bf16 — constant block, fetched once
    h = h_scratch[...]        # (B_TILE, H_PAD) f32

    # Statically unrolled loop over the timesteps resident in this grid step.
    for i in range(t_chunk):
        pre = xproj_ref[:, i, :] + jnp.dot(
            h.astype(jnp.bfloat16), w, preferred_element_type=jnp.float32
        )
        h = jnp.tanh(pre)                       # f32 VPU/EUP path
        out_ref[:, i, :] = h.astype(out_ref.dtype)

    h_scratch[...] = h


def rnn_forward(inputs, w_ih, w_hh, b, h0=None, *, dropout_p=0.1):
    """inputs: (batch, seq, input_dim) or (seq, input_dim) float32
       w_ih:   (input_dim, hidden)
       w_hh:   (hidden, hidden)
       b:      (hidden,)
       h0:     optional (batch, hidden); zeros if None (PyTorch `state=None`)
       returns (batch, seq, hidden)  (or (seq, hidden) if unbatched)."""
    del dropout_p  # eval-mode dropout == identity

    unbatched = inputs.ndim == 2
    if unbatched:
        inputs = inputs[None]
        if h0 is not None:
            h0 = h0[None]

    batch, seq, _ = inputs.shape
    hidden = w_ih.shape[1]
    if h0 is None:
        h0 = jnp.zeros((batch, hidden), jnp.float32)

    # ---- hoisted input projection: one large matmul over the whole sequence ----
    xproj = jnp.einsum(
        "bti,ih->bth",
        inputs.astype(jnp.float32),
        w_ih.astype(jnp.float32),
        precision=jax.lax.Precision.HIGHEST,
    ) + b.astype(jnp.float32)

    # ---- pad to TPU-native tile sizes ----
    b_tile = min(_round_up(batch, 8), 128)      # sublane-dense batch tile
    b_pad = _round_up(batch, b_tile)
    h_pad = _round_up(hidden, 128)              # lane-dense hidden dimension
    t_chunk = min(seq, 16)                      # timesteps resident per grid step
    s_pad = _round_up(seq, t_chunk)

    xproj_p = jnp.pad(
        xproj, ((0, b_pad - batch), (0, s_pad - seq), (0, h_pad - hidden))
    )
    whh_p = jnp.pad(
        w_hh, ((0, h_pad - hidden), (0, h_pad - hidden))
    ).astype(jnp.bfloat16)
    h0_p = jnp.pad(h0.astype(jnp.float32), ((0, b_pad - batch), (0, h_pad - hidden)))

    grid = (b_pad // b_tile, s_pad // t_chunk)

    out_p = pl.pallas_call(
        functools.partial(_rnn_recurrent_kernel, t_chunk=t_chunk),
        out_shape=jax.ShapeDtypeStruct((b_pad, s_pad, h_pad), jnp.float32),
        grid_spec=pltpu.PrefetchScalarGridSpec(
            num_scalar_prefetch=0,
            grid=grid,
            in_specs=[
                pl.BlockSpec((b_tile, t_chunk, h_pad), lambda bi, ti: (bi, ti, 0)),
                pl.BlockSpec((h_pad, h_pad), lambda bi, ti: (0, 0)),
                pl.BlockSpec((b_tile, h_pad), lambda bi, ti: (bi, 0)),
            ],
            out_specs=pl.BlockSpec((b_tile, t_chunk, h_pad), lambda bi, ti: (bi, ti, 0)),
            scratch_shapes=[pltpu.VMEM((b_tile, h_pad), jnp.float32)],
        ),
        compiler_params=pltpu.CompilerParams(
            # batch tiles are independent -> megacore-parallel on v7x;
            # the time axis carries the recurrence and must stay sequential.
            dimension_semantics=("parallel", "arbitrary"),
        ),
    )(xproj_p, whh_p, h0_p)

    out = out_p[:batch, :seq, :hidden]
    return out[0] if unbatched else out


def rnn_reference(inputs, w_ih, w_hh, b, h0=None):
    """Plain JAX reference mirroring the kernel's math (f32 HIGHEST input projection,
    bf16 x bf16 -> f32 recurrent matmul, f32 tanh), with the PyTorch time loop."""
    batch, seq, _ = inputs.shape
    xproj = jnp.einsum(
        "bti,ih->bth", inputs, w_ih, precision=jax.lax.Precision.HIGHEST
    ) + b
    hidden = w_ih.shape[1]
    h = jnp.zeros((batch, hidden), jnp.float32) if h0 is None else h0
    w_hh_bf = w_hh.astype(jnp.bfloat16)
    outs = []
    for i in range(seq):
        h = jnp.tanh(
            xproj[:, i, :]
            + jnp.dot(h.astype(jnp.bfloat16), w_hh_bf,
                      preferred_element_type=jnp.float32)
        )
        outs.append(h)
    return jnp.stack(outs, axis=1)


if __name__ == "__main__":
    batch, seq, in_dim, hidden = 2, 8, 16, 32

    key = jax.random.PRNGKey(0)
    k_x, k_wih, k_whh, k_b = jax.random.split(key, 4)

    x = jax.random.normal(k_x, (batch, seq, in_dim), jnp.float32)
    scale_i = 1.0 / jnp.sqrt(jnp.float32(in_dim))
    scale_h = 1.0 / jnp.sqrt(jnp.float32(hidden))
    w_ih = jax.random.uniform(k_wih, (in_dim, hidden), jnp.float32, -scale_i, scale_i)
    w_hh = jax.random.uniform(k_whh, (hidden, hidden), jnp.float32, -scale_h, scale_h)
    b = jax.random.uniform(k_b, (hidden,), jnp.float32, -scale_h, scale_h)

    out = rnn_forward(x, w_ih, w_hh, b)
    out = jax.block_until_ready(out)

    ref = rnn_reference(x, w_ih, w_hh, b)
    assert out.shape == (batch, seq, hidden)
    assert jnp.allclose(out, ref, atol=1e-5, rtol=1e-4), float(
        jnp.max(jnp.abs(out - ref))
    )

    print("KERNEL_OK")
</pallas_src>

<mosaic_0001>
module attributes {stable_mosaic.version = 11 : i64} {
  func.func @_rnn_recurrent_kernel(%arg0: i32, %arg1: i32, %arg2: memref<8x8x128xf32, #tpu.memory_space<vmem>>, %arg3: memref<128x128xbf16, #tpu.memory_space<vmem>>, %arg4: memref<8x128xf32, #tpu.memory_space<vmem>>, %arg5: memref<8x8x128xf32, #tpu.memory_space<vmem>>, %arg6: memref<8x128xf32, #tpu.memory_space<vmem>>) attributes {dimension_semantics = [#tpu.dimension_semantics<parallel>, #tpu.dimension_semantics<arbitrary>], iteration_bounds = array<i64: 1, 1>, scalar_prefetch = 0 : i64, scratch_operands = 1 : i64, tpu.core_type = #tpu.core_type<tc>, window_params = [{transform_indices = @transform_0, window_bounds = array<i64: 8, 8, 128>}, {pipeline_mode = #tpu.pipeline_mode<synchronous>, transform_indices = @transform_1, window_bounds = array<i64: 128, 128>}, {transform_indices = @transform_2, window_bounds = array<i64: 8, 128>}, {transform_indices = @transform_3, window_bounds = array<i64: 8, 8, 128>}]} {
    %c0_i32 = arith.constant 0 : i32
    %0 = arith.cmpi eq, %arg1, %c0_i32 : i32
    %1 = arith.extui %0 : i1 to i32
    %c0_i32_0 = arith.constant 0 : i32
    %2 = arith.cmpi ne, %1, %c0_i32_0 : i32
    scf.if %2 {
      %c0_54 = arith.constant 0 : index
      %c0_55 = arith.constant 0 : index
      %78 = vector.load %arg4[%c0_54, %c0_55] : memref<8x128xf32, #tpu.memory_space<vmem>>, vector<8x128xf32>
      %c0_56 = arith.constant 0 : index
      %c0_57 = arith.constant 0 : index
      %79 = vector.load %arg6[%c0_56, %c0_57] : memref<8x128xf32, #tpu.memory_space<vmem>>, vector<8x128xf32>
      tpu.vector_store %arg6[%c0_56, %c0_57], %78 {strides = array<i32>} : memref<8x128xf32, #tpu.memory_space<vmem>>, vector<8x128xf32>,
    } else {
    }
    %c0 = arith.constant 0 : index
    %c0_1 = arith.constant 0 : index
    %3 = vector.load %arg3[%c0, %c0_1] : memref<128x128xbf16, #tpu.memory_space<vmem>>, vector<128x128xbf16>
    %c0_2 = arith.constant 0 : index
    %c0_3 = arith.constant 0 : index
    %4 = vector.load %arg6[%c0_2, %c0_3] : memref<8x128xf32, #tpu.memory_space<vmem>>, vector<8x128xf32>
    %c0_4 = arith.constant 0 : index
    %c0_5 = arith.constant 0 : index
    %c0_6 = arith.constant 0 : index
    %5 = vector.load %arg2[%c0_4, %c0_5, %c0_6] : memref<8x8x128xf32, #tpu.memory_space<vmem>>, vector<8x1x128xf32>
    %6 = vector.shape_cast %5 : vector<8x1x128xf32> to vector<8x128xf32>
    %7 = arith.truncf %4 : vector<8x128xf32> to vector<8x128xbf16>
    %cst = arith.constant dense<0.000000e+00> : vector<8x128xf32>
    %8 = tpu.matmul %7, %3, %cst {dimension_numbers = #tpu.dot_dimension_numbers<[1], [0], [0], [1], [0, 0, 1, 1], [], []>} : vector<8x128xbf16>, vector<128x128xbf16>, vector<8x128xf32> -> vector<8x128xf32>
    %9 = arith.addf %6, %8 : vector<8x128xf32>
    %10 = math.tanh %9 : vector<8x128xf32>
    %c0_7 = arith.constant 0 : index
    %c0_8 = arith.constant 0 : index
    %c0_9 = arith.constant 0 : index
    %11 = vector.load %arg5[%c0_7, %c0_8, %c0_9] : memref<8x8x128xf32, #tpu.memory_space<vmem>>, vector<8x1x128xf32>
    %12 = vector.shape_cast %11 : vector<8x1x128xf32> to vector<8x128xf32>
    %13 = vector.shape_cast %10 : vector<8x128xf32> to vector<8x1x128xf32>
    tpu.vector_store %arg5[%c0_7, %c0_8, %c0_9], %13 {strides = array<i32>} : memref<8x8x128xf32, #tpu.memory_space<vmem>>, vector<8x1x128xf32>,
    %c0_10 = arith.constant 0 : index
    %c1 = arith.constant 1 : index
    %c0_11 = arith.constant 0 : index
    %14 = vector.load %arg2[%c0_10, %c1, %c0_11] : memref<8x8x128xf32, #tpu.memory_space<vmem>>, vector<8x1x128xf32>
    %15 = vector.shape_cast %14 : vector<8x1x128xf32> to vector<8x128xf32>
    %16 = arith.truncf %10 : vector<8x128xf32> to vector<8x128xbf16>
    %cst_12 = arith.constant dense<0.000000e+00> : vector<8x128xf32>
    %17 = tpu.matmul %16, %3, %cst_12 {dimension_numbers = #tpu.dot_dimension_numbers<[1], [0], [0], [1], [0, 0, 1, 1], [], []>} : vector<8x128xbf16>, vector<128x128xbf16>, vector<8x128xf32> -> vector<8x128xf32>
    %18 = arith.addf %15, %17 : vector<8x128xf32>
    %19 = math.tanh %18 : vector<8x128xf32>
    %c0_13 = arith.constant 0 : index
    %c1_14 = arith.constant 1 : index
    %c0_15 = arith.constant 0 : index
    %20 = vector.load %arg5[%c0_13, %c1_14, %c0_15] : memref<8x8x128xf32, #tpu.memory_space<vmem>>, vector<8x1x128xf32>
    %21 = vector.shape_cast %20 : vector<8x1x128xf32> to vector<8x128xf32>
    %22 = vector.shape_cast %19 : vector<8x128xf32> to vector<8x1x128xf32>
    tpu.vector_store %arg5[%c0_13, %c1_14, %c0_15], %22 {strides = array<i32>} : memref<8x8x128xf32, #tpu.memory_space<vmem>>, vector<8x1x128xf32>,
    %c0_16 = arith.constant 0 : index
    %c2 = arith.constant 2 : index
    %c0_17 = arith.constant 0 : index
    %23 = vector.load %arg2[%c0_16, %c2, %c0_17] : memref<8x8x128xf32, #tpu.memory_space<vmem>>, vector<8x1x128xf32>
    %24 = vector.shape_cast %23 : vector<8x1x128xf32> to vector<8x128xf32>
    %25 = arith.truncf %19 : vector<8x128xf32> to vector<8x128xbf16>
    %cst_18 = arith.constant dense<0.000000e+00> : vector<8x128xf32>
    %26 = tpu.matmul %25, %3, %cst_18 {dimension_numbers = #tpu.dot_dimension_numbers<[1], [0], [0], [1], [0, 0, 1, 1], [], []>} : vector<8x128xbf16>, vector<128x128xbf16>, vector<8x128xf32> -> vector<8x128xf32>
    %27 = arith.addf %24, %26 : vector<8x128xf32>
    %28 = math.tanh %27 : vector<8x128xf32>
    %c0_19 = arith.constant 0 : index
    %c2_20 = arith.constant 2 : index
    %c0_21 = arith.constant 0 : index
    %29 = vector.load %arg5[%c0_19, %c2_20, %c0_21] : memref<8x8x128xf32, #tpu.memory_space<vmem>>, vector<8x1x128xf32>
    %30 = vector.shape_cast %29 : vector<8x1x128xf32> to vector<8x128xf32>
    %31 = vector.shape_cast %28 : vector<8x128xf32> to vector<8x1x128xf32>
    tpu.vector_store %arg5[%c0_19, %c2_20, %c0_21], %31 {strides = array<i32>} : memref<8x8x128xf32, #tpu.memory_space<vmem>>, vector<8x1x128xf32>,
    %c0_22 = arith.constant 0 : index
    %c3 = arith.constant 3 : index
    %c0_23 = arith.constant 0 : index
    %32 = vector.load %arg2[%c0_22, %c3, %c0_23] : memref<8x8x128xf32, #tpu.memory_space<vmem>>, vector<8x1x128xf32>
    %33 = vector.shape_cast %32 : vector<8x1x128xf32> to vector<8x128xf32>
    %34 = arith.truncf %28 : vector<8x128xf32> to vector<8x128xbf16>
    %cst_24 = arith.constant dense<0.000000e+00> : vector<8x128xf32>
    %35 = tpu.matmul %34, %3, %cst_24 {dimension_numbers = #tpu.dot_dimension_numbers<[1], [0], [0], [1], [0, 0, 1, 1], [], []>} : vector<8x128xbf16>, vector<128x128xbf16>, vector<8x128xf32> -> vector<8x128xf32>
    %36 = arith.addf %33, %35 : vector<8x128xf32>
    %37 = math.tanh %36 : vector<8x128xf32>
    %c0_25 = arith.constant 0 : index
    %c3_26 = arith.constant 3 : index
    %c0_27 = arith.constant 0 : index
    %38 = vector.load %arg5[%c0_25, %c3_26, %c0_27] : memref<8x8x128xf32, #tpu.memory_space<vmem>>, vector<8x1x128xf32>
    %39 = vector.shape_cast %38 : vector<8x1x128xf32> to vector<8x128xf32>
    %40 = vector.shape_cast %37 : vector<8x128xf32> to vector<8x1x128xf32>
    tpu.vector_store %arg5[%c0_25, %c3_26, %c0_27], %40 {strides = array<i32>} : memref<8x8x128xf32, #tpu.memory_space<vmem>>, vector<8x1x128xf32>,
    %c0_28 = arith.constant 0 : index
    %c4 = arith.constant 4 : index
    %c0_29 = arith.constant 0 : index
    %41 = vector.load %arg2[%c0_28, %c4, %c0_29] : memref<8x8x128xf32, #tpu.memory_space<vmem>>, vector<8x1x128xf32>
    %42 = vector.shape_cast %41 : vector<8x1x128xf32> to vector<8x128xf32>
    %43 = arith.truncf %37 : vector<8x128xf32> to vector<8x128xbf16>
    %cst_30 = arith.constant dense<0.000000e+00> : vector<8x128xf32>
    %44 = tpu.matmul %43, %3, %cst_30 {dimension_numbers = #tpu.dot_dimension_numbers<[1], [0], [0], [1], [0, 0, 1, 1], [], []>} : vector<8x128xbf16>, vector<128x128xbf16>, vector<8x128xf32> -> vector<8x128xf32>
    %45 = arith.addf %42, %44 : vector<8x128xf32>
    %46 = math.tanh %45 : vector<8x128xf32>
    %c0_31 = arith.constant 0 : index
    %c4_32 = arith.constant 4 : index
    %c0_33 = arith.constant 0 : index
    %47 = vector.load %arg5[%c0_31, %c4_32, %c0_33] : memref<8x8x128xf32, #tpu.memory_space<vmem>>, vector<8x1x128xf32>
    %48 = vector.shape_cast %47 : vector<8x1x128xf32> to vector<8x128xf32>
    %49 = vector.shape_cast %46 : vector<8x128xf32> to vector<8x1x128xf32>
    tpu.vector_store %arg5[%c0_31, %c4_32, %c0_33], %49 {strides = array<i32>} : memref<8x8x128xf32, #tpu.memory_space<vmem>>, vector<8x1x128xf32>,
    %c0_34 = arith.constant 0 : index
    %c5 = arith.constant 5 : index
    %c0_35 = arith.constant 0 : index
    %50 = vector.load %arg2[%c0_34, %c5, %c0_35] : memref<8x8x128xf32, #tpu.memory_space<vmem>>, vector<8x1x128xf32>
    %51 = vector.shape_cast %50 : vector<8x1x128xf32> to vector<8x128xf32>
    %52 = arith.truncf %46 : vector<8x128xf32> to vector<8x128xbf16>
    %cst_36 = arith.constant dense<0.000000e+00> : vector<8x128xf32>
    %53 = tpu.matmul %52, %3, %cst_36 {dimension_numbers = #tpu.dot_dimension_numbers<[1], [0], [0], [1], [0, 0, 1, 1], [], []>} : vector<8x128xbf16>, vector<128x128xbf16>, vector<8x128xf32> -> vector<8x128xf32>
    %54 = arith.addf %51, %53 : vector<8x128xf32>
    %55 = math.tanh %54 : vector<8x128xf32>
    %c0_37 = arith.constant 0 : index
    %c5_38 = arith.constant 5 : index
    %c0_39 = arith.constant 0 : index
    %56 = vector.load %arg5[%c0_37, %c5_38, %c0_39] : memref<8x8x128xf32, #tpu.memory_space<vmem>>, vector<8x1x128xf32>
    %57 = vector.shape_cast %56 : vector<8x1x128xf32> to vector<8x128xf32>
    %58 = vector.shape_cast %55 : vector<8x128xf32> to vector<8x1x128xf32>
    tpu.vector_store %arg5[%c0_37, %c5_38, %c0_39], %58 {strides = array<i32>} : memref<8x8x128xf32, #tpu.memory_space<vmem>>, vector<8x1x128xf32>,
    %c0_40 = arith.constant 0 : index
    %c6 = arith.constant 6 : index
    %c0_41 = arith.constant 0 : index
    %59 = vector.load %arg2[%c0_40, %c6, %c0_41] : memref<8x8x128xf32, #tpu.memory_space<vmem>>, vector<8x1x128xf32>
    %60 = vector.shape_cast %59 : vector<8x1x128xf32> to vector<8x128xf32>
    %61 = arith.truncf %55 : vector<8x128xf32> to vector<8x128xbf16>
    %cst_42 = arith.constant dense<0.000000e+00> : vector<8x128xf32>
    %62 = tpu.matmul %61, %3, %cst_42 {dimension_numbers = #tpu.dot_dimension_numbers<[1], [0], [0], [1], [0, 0, 1, 1], [], []>} : vector<8x128xbf16>, vector<128x128xbf16>, vector<8x128xf32> -> vector<8x128xf32>
    %63 = arith.addf %60, %62 : vector<8x128xf32>
    %64 = math.tanh %63 : vector<8x128xf32>
    %c0_43 = arith.constant 0 : index
    %c6_44 = arith.constant 6 : index
    %c0_45 = arith.constant 0 : index
    %65 = vector.load %arg5[%c0_43, %c6_44, %c0_45] : memref<8x8x128xf32, #tpu.memory_space<vmem>>, vector<8x1x128xf32>
    %66 = vector.shape_cast %65 : vector<8x1x128xf32> to vector<8x128xf32>
    %67 = vector.shape_cast %64 : vector<8x128xf32> to vector<8x1x128xf32>
    tpu.vector_store %arg5[%c0_43, %c6_44, %c0_45], %67 {strides = array<i32>} : memref<8x8x128xf32, #tpu.memory_space<vmem>>, vector<8x1x128xf32>,
    %c0_46 = arith.constant 0 : index
    %c7 = arith.constant 7 : index
    %c0_47 = arith.constant 0 : index
    %68 = vector.load %arg2[%c0_46, %c7, %c0_47] : memref<8x8x128xf32, #tpu.memory_space<vmem>>, vector<8x1x128xf32>
    %69 = vector.shape_cast %68 : vector<8x1x128xf32> to vector<8x128xf32>
    %70 = arith.truncf %64 : vector<8x128xf32> to vector<8x128xbf16>
    %cst_48 = arith.constant dense<0.000000e+00> : vector<8x128xf32>
    %71 = tpu.matmul %70, %3, %cst_48 {dimension_numbers = #tpu.dot_dimension_numbers<[1], [0], [0], [1], [0, 0, 1, 1], [], []>} : vector<8x128xbf16>, vector<128x128xbf16>, vector<8x128xf32> -> vector<8x128xf32>
    %72 = arith.addf %69, %71 : vector<8x128xf32>
    %73 = math.tanh %72 : vector<8x128xf32>
    %c0_49 = arith.constant 0 : index
    %c7_50 = arith.constant 7 : index
    %c0_51 = arith.constant 0 : index
    %74 = vector.load %arg5[%c0_49, %c7_50, %c0_51] : memref<8x8x128xf32, #tpu.memory_space<vmem>>, vector<8x1x128xf32>
    %75 = vector.shape_cast %74 : vector<8x1x128xf32> to vector<8x128xf32>
    %76 = vector.shape_cast %73 : vector<8x128xf32> to vector<8x1x128xf32>
    tpu.vector_store %arg5[%c0_49, %c7_50, %c0_51], %76 {strides = array<i32>} : memref<8x8x128xf32, #tpu.memory_space<vmem>>, vector<8x1x128xf32>,
    %c0_52 = arith.constant 0 : index
    %c0_53 = arith.constant 0 : index
    %77 = vector.load %arg6[%c0_52, %c0_53] : memref<8x128xf32, #tpu.memory_space<vmem>>, vector<8x128xf32>
    tpu.vector_store %arg6[%c0_52, %c0_53], %73 {strides = array<i32>} : memref<8x128xf32, #tpu.memory_space<vmem>>, vector<8x128xf32>,
    return
  }
  func.func @transform_0(%arg0: i32, %arg1: i32) -> (i32, i32, i32) {
    %c0_i32 = arith.constant 0 : i32
    %c0_i32_0 = arith.constant 0 : i32
    return %arg0, %arg1, %c0_i32 : i32, i32, i32
  }
  func.func @transform_1(%arg0: i32, %arg1: i32) -> (i32, i32) {
    %c0_i32 = arith.constant 0 : i32
    %c0_i32_0 = arith.constant 0 : i32
    %c0_i32_1 = arith.constant 0 : i32
    return %c0_i32, %c0_i32_0 : i32, i32
  }
  func.func @transform_2(%arg0: i32, %arg1: i32) -> (i32, i32) {
    %c0_i32 = arith.constant 0 : i32
    %c0_i32_0 = arith.constant 0 : i32
    return %arg0, %c0_i32 : i32, i32
  }
  func.func @transform_3(%arg0: i32, %arg1: i32) -> (i32, i32, i32) {
    %c0_i32 = arith.constant 0 : i32
    %c0_i32_0 = arith.constant 0 : i32
    return %arg0, %arg1, %c0_i32 : i32, i32, i32
  }
}

</mosaic_0001>

<bundles_post_ra>
// kernel: tpu_custom_call.1
= control target key start
LH: loop header
LB: loop body
LE: loop exit
PB: predicated region body
PF: predicated region fallthrough
CT: control target
= control target key end

     0   :  { %8 = vsyncpa [#allocation4], 0  ;;  %s1933_s0 = inlined_call_operand.hbm [shape: f32[8,8,128], index: 0, kind: input, shape index: {}]   ;;  %s1934_s1 = inlined_call_operand.hbm [shape: bf16[128,128], index: 1, kind: input, shape index: {}]   ;;  %s1935_s2 = inlined_call_operand.hbm [shape: f32[8,128], index: 2, kind: input, shape index: {}]   ;;  %s1936_s3 = inlined_call_operand.hbm [shape: f32[8,8,128], index: 3, kind: output, shape index: {}]  }
   0x1   :  { %9 = vsyncpa [#allocation7], 0 }
   0x2   :  { %10 = vsyncpa [#allocation5], 0  ;;  %s1648_s12 = smov [#allocation6]   ;;  %s1554_s16 = scalar_lea.hbm %s1934_s1, 1024 }
   0x3   :  { %s28_s13 = sshll.u32 %s1648_s12, 4  ;;  %p1555_p0 = scmp.ne.s32.totalorder %s1934_s1, %s1554_s16  ;;  %s29_s13 = int_to_ptr.vmem [resolvable:$true] %s28_s13 }
   0x4   :  { %p1558_p1 = scmp.lt.u32.totalorder %s1554_s16, %s1934_s1 }
   0x6   :  { %p1560_p2 = pnand %p1558_p1, %p1555_p0 }
   0x8   :  { %1563 = shalt.err (!%p1560_p2)
}
   0x9   :  { %s1564_s21 = scalar_lea.vmem %s29_s13, 1024  ;;  %p1569_p4 = scmp.lt.s32.totalorder %s29_s13, %s29_s13 }
   0xa   :  { %p1565_p3 = scmp.ne.s32.totalorder %s29_s13, %s1564_s21  ;;  %p1570_p5 = scmp.lt.s32.totalorder %s1564_s21, %s1564_s21 }
   0xc   :  { %p1571_p6 = por %p1570_p5, %p1569_p4 }
   0xe   :  { %p1572_p7 = pnand %p1571_p6, %p1565_p3 }
  0x10   :  { %1575 = shalt.err (!%p1572_p7)
}
  0x11   :  { %s1649_s22 = smov 64   ;;  %s1650_s23 = smov 4  }
  0x12   :  { %34 = dma.hbm_to_vmem [thread:$0]  %s1934_s1, 1024, %s29_s13, [#allocation7], %s1649_s22, %s1649_s22, %s1650_s23  }
  0x13   :  { %s1651_s26 = smov [#allocation3]   ;;  %s1576_s30 = scalar_lea.hbm %s1933_s0, 1024 }
  0x14   :  { %s16_s27 = sshll.u32 %s1651_s26, 4  ;;  %p1577_p8 = scmp.ne.s32.totalorder %s1933_s0, %s1576_s30  ;;  %s17_s27 = int_to_ptr.vmem [resolvable:$true] %s16_s27 }
  0x15   :  { %p1580_p9 = scmp.lt.u32.totalorder %s1576_s30, %s1933_s0 }
  0x17   :  { %p1582_p10 = pnand %p1580_p9, %p1577_p8 }
  0x19   :  { %1585 = shalt.err (!%p1582_p10)
}
  0x1a   :  { %s1586_s8 = scalar_lea.vmem %s17_s27, 1024  ;;  %p1591_p12 = scmp.lt.s32.totalorder %s17_s27, %s17_s27 }
  0x1b   :  { %p1587_p11 = scmp.ne.s32.totalorder %s17_s27, %s1586_s8  ;;  %p1592_p13 = scmp.lt.s32.totalorder %s1586_s8, %s1586_s8 }
  0x1d   :  { %p1593_p0 = por %p1592_p13, %p1591_p12 }
  0x1f   :  { %p1594_p1 = pnand %p1593_p0, %p1587_p11 }
  0x21   :  { %1597 = shalt.err (!%p1594_p1)
}
  0x22   :  { %s1652_s1 = smov 128   ;;  %s1653_s9 = smov 8  }
  0x23   :  { %22 = dma.hbm_to_vmem [thread:$0]  %s1933_s0, 1024, %s17_s27, [#allocation4], %s1652_s1, %s1652_s1, %s1653_s9  }
  0x24   :  { %s1654_s12 = smov [#allocation8]   ;;  %s1598_s16 = scalar_lea.hbm %s1935_s2, 128 }
  0x25   :  { %s41_s13 = sshll.u32 %s1654_s12, 4  ;;  %p1599_p2 = scmp.ne.s32.totalorder %s1935_s2, %s1598_s16  ;;  %s42_s13 = int_to_ptr.vmem [resolvable:$true] %s41_s13 }
  0x26   :  { %p1602_p3 = scmp.lt.u32.totalorder %s1598_s16, %s1935_s2 }
  0x28   :  { %p1604_p4 = pnand %p1602_p3, %p1599_p2 }
  0x2a   :  { %1607 = shalt.err (!%p1604_p4)
}
  0x2b   :  { %s1608_s21 = scalar_lea.vmem %s42_s13, 128  ;;  %p1613_p6 = scmp.lt.s32.totalorder %s42_s13, %s42_s13 }
  0x2c   :  { %p1609_p5 = scmp.ne.s32.totalorder %s42_s13, %s1608_s21  ;;  %p1614_p7 = scmp.lt.s32.totalorder %s1608_s21, %s1608_s21 }
  0x2e   :  { %p1615_p8 = por %p1614_p7, %p1613_p6 }
  0x30   :  { %p1616_p9 = pnand %p1615_p8, %p1609_p5 }
  0x32   :  { %1619 = shalt.err (!%p1616_p9)
}
  0x33   :  { %44 = dma.hbm_to_vmem [thread:$0]  %s1935_s2, 128, %s42_s13, [#allocation7]  }
  0x34   :  { %1642 = dma.done.wait [#allocation4], 1024  }
  0x35   :  { %1643 = vsyncadd [#allocation4], 4294966272 }
  0x36   :  { %1644 = dma.done.wait [#allocation7], 1152  }
  0x37   :  { %1645 = vsyncadd [#allocation7], 4294966144  ;;  %v1655_v0 = vmov 0.0   ;;  %vm1656_vm0 = vmmov 0   ;;  %v1723_v1 = vld [vmem:[#allocation6] sm:$0xff]   ;;  %v1726_v2 = vld [vmem:[#allocation6 + $0x8] sm:$0xff]  }
  0x38   :  { %1240 = vmatprep.subr.bf16.mxu0 %v1655_v0  ;;  %1256 = vmatprep.mubr.msk.bf16.mxu0 %vm1656_vm0, %v1655_v0  ;;  %v1732_v3 = vld [vmem:[#allocation6 + $0x10] sm:$0xff]   ;;  %v1738_v4 = vld [vmem:[#allocation6 + $0x18] sm:$0xff]   ;;  %v1744_v5 = vld [vmem:[#allocation6 + $0x20] sm:$0xff]   ;;  %vm248_vm1 = vcmask 1041409   ;;  %vm251_vm2 = vcmask 1042434   ;;  %vm254_vm3 = vcmask 1043459  }
  0x39   :  { %1260 = vmatprep.subr.bf16.mxu1 %v1655_v0  ;;  %1276 = vmatprep.mubr.msk.bf16.mxu1 %vm1656_vm0, %v1655_v0  ;;  %v1750_v6 = vld [vmem:[#allocation6 + $0x28] sm:$0xff]   ;;  %v1756_v7 = vld [vmem:[#allocation6 + $0x30] sm:$0xff]   ;;  %v1762_v8 = vld [vmem:[#allocation6 + $0x38] sm:$0xff]   ;;  %vm257_vm4 = vcmask 1044484   ;;  %vm260_vm5 = vcmask 1045509   ;;  %vm263_vm6 = vcmask 1046534  }
  0x3a   :  { %1241 = vmatpush3.bf16.msra.mxu0 %v1723_v1  ;;  %1261 = vmatpush3.bf16.msra.mxu1 %v1723_v1  ;;  %v59_v9 = vld [vmem:[#allocation8] sm:$0xff]  ;;  %v79_v12 = vld [vmem:[#allocation3 + $0x8] sm:$0x1]  ;;  %v80_v13 = vld [vmem:[#allocation3 + $0x10] sm:$0x1]  ;;  %vm266_vm7 = vcmask 1047559  }
  0x3b   :  { %1242 = vmatprep.subr.bf16.mxu0 %v1655_v0  ;;  %1262 = vmatprep.subr.bf16.mxu1 %v1655_v0  ;;  %v86_v10 = vpack.c.bf16 %v59_v9, %v59_v9  ;;  %v78_v11 = vld [vmem:[#allocation3] sm:$0x1]  ;;  %v81_v14 = vld [vmem:[#allocation3 + $0x18] sm:$0x1]  ;;  %v83_v22 = vld [vmem:[#allocation3 + $0x28] sm:$0x1] }
  0x3c   :  { %v82_v15 = vld [vmem:[#allocation3 + $0x20] sm:$0x1]  ;;  %v84_v27 = vld [vmem:[#allocation3 + $0x30] sm:$0x1]  ;;  %v85_v34 = vld [vmem:[#allocation3 + $0x38] sm:$0x1] }
  0x3d   :  { %s1657_s2 = smov [#allocation9]  }
  0x3e   :  { %1243 = vmatpush3.bf16.msra.mxu0 %v1726_v2  ;;  %1263 = vmatpush3.bf16.msra.mxu1 %v1726_v2  ;;  %s1147_s23 = sshll.u32 %s1657_s2, 4  ;;  %s1148_s23 = int_to_ptr.vmem [resolvable:$true] %s1147_s23 }
  0x3f   :  { %1244 = vmatprep.subr.bf16.mxu0 %v1655_v0  ;;  %1264 = vmatprep.subr.bf16.mxu1 %v1655_v0  ;;  %s1620_s24 = scalar_lea.vmem %s1148_s23, 1024  ;;  %p1625_p11 = scmp.lt.s32.totalorder %s1148_s23, %s1148_s23 }
  0x40   :  { %p1621_p10 = scmp.ne.s32.totalorder %s1148_s23, %s1620_s24  ;;  %p1626_p12 = scmp.lt.s32.totalorder %s1620_s24, %s1620_s24 }
  0x42   :  { %1245 = vmatpush3.bf16.msra.mxu0 %v1732_v3  ;;  %1265 = vmatpush3.bf16.msra.mxu1 %v1732_v3  ;;  %p1627_p13 = por %p1626_p12, %p1625_p11 }
  0x43   :  { %1246 = vmatprep.subr.bf16.mxu0 %v1655_v0  ;;  %1266 = vmatprep.subr.bf16.mxu1 %v1655_v0 }
  0x44   :  { %p1628_p0 = pnand %p1627_p13, %p1621_p10 }
  0x46   :  { %1247 = vmatpush3.bf16.msra.mxu0 %v1738_v4  ;;  %1267 = vmatpush3.bf16.msra.mxu1 %v1738_v4 }
  0x47   :  { %1248 = vmatprep.subr.bf16.mxu0 %v1655_v0  ;;  %1268 = vmatprep.subr.bf16.mxu1 %v1655_v0 }
  0x4a   :  { %1249 = vmatpush3.bf16.msra.mxu0 %v1744_v5  ;;  %1269 = vmatpush3.bf16.msra.mxu1 %v1744_v5 }
  0x4b   :  { %1250 = vmatprep.subr.bf16.mxu0 %v1655_v0  ;;  %1270 = vmatprep.subr.bf16.mxu1 %v1655_v0 }
  0x4e   :  { %1251 = vmatpush3.bf16.msra.mxu0 %v1750_v6  ;;  %1271 = vmatpush3.bf16.msra.mxu1 %v1750_v6 }
  0x4f   :  { %1252 = vmatprep.subr.bf16.mxu0 %v1655_v0  ;;  %1272 = vmatprep.subr.bf16.mxu1 %v1655_v0 }
  0x52   :  { %1253 = vmatpush3.bf16.msra.mxu0 %v1756_v7  ;;  %1273 = vmatpush3.bf16.msra.mxu1 %v1756_v7 }
  0x53   :  { %1254 = vmatprep.subr.bf16.mxu0 %v1655_v0  ;;  %1274 = vmatprep.subr.bf16.mxu1 %v1655_v0 }
  0x56   :  { %1255 = vmatpush3.bf16.msra.mxu0 %v1762_v8  ;;  %1275 = vmatpush3.bf16.msra.mxu1 %v1762_v8 }
  0x57   :  { %1280 = vmatprep.subr.bf16.mxu0 %v1655_v0  ;;  %1300 = vmatprep.subr.bf16.mxu1 %v1655_v0 }
  0x59   :  { %1257 = vmatmul.mubr.bf16.vlgmr.msra.gmra.mrb[0].mxu0 %v86_v10 }
  0x5a   :  { %1281 = vmatpush3.bf16.msra.mxu0 %v1723_v1  ;;  %1296 = vmatprep.mubr.msk.bf16.mxu0 %vm1656_vm0, %v1655_v0 }
  0x5b   :  { %1282 = vmatprep.subr.bf16.mxu0 %v1655_v0 }
  0x5e   :  { %1283 = vmatpush3.bf16.msra.mxu0 %v1726_v2 }
  0x5f   :  { %1284 = vmatprep.subr.bf16.mxu0 %v1655_v0 }
  0x62   :  { %1285 = vmatpush3.bf16.msra.mxu0 %v1732_v3 }
  0x63   :  { %1286 = vmatprep.subr.bf16.mxu0 %v1655_v0 }
  0x66   :  { %1287 = vmatpush3.bf16.msra.mxu0 %v1738_v4 }
  0x67   :  { %1288 = vmatprep.subr.bf16.mxu0 %v1655_v0 }
  0x6a   :  { %1289 = vmatpush3.bf16.msra.mxu0 %v1744_v5 }
  0x6b   :  { %1290 = vmatprep.subr.bf16.mxu0 %v1655_v0 }
  0x6e   :  { %1291 = vmatpush3.bf16.msra.mxu0 %v1750_v6 }
  0x6f   :  { %1292 = vmatprep.subr.bf16.mxu0 %v1655_v0 }
  0x72   :  { %1293 = vmatpush3.bf16.msra.mxu0 %v1756_v7 }
  0x73   :  { %1294 = vmatprep.subr.bf16.mxu0 %v1655_v0 }
  0x76   :  { %1295 = vmatpush3.bf16.msra.mxu0 %v1762_v8 }
  0x77   :  { %1320 = vmatprep.subr.bf16.mxu0 %v1655_v0 }
 0x12c   :  { %v169_v16 = vpop.f32.mrb[0].mxu0 }
 0x12d   :  { %v176_v17 = vrot.slane %v169_v16, 1  ;;  %v177_v18 = vrot.slane %v169_v16, 2  ;;  %v178_v19 = vrot.slane %v169_v16, 3  ;;  %v179_v20 = vrot.slane %v169_v16, 4  ;;  %v1258_v21 = vpop.f32.mrb[1].mxu0 }
 0x12e   :  { %v180_v23 = vrot.slane %v169_v16, 5  ;;  %v181_v24 = vrot.slane %v169_v16, 6  ;;  %v191_v25 = vadd.f32 %v169_v16, %v78_v11  ;;  %v172_v26 = vpop.f32.mrb[2].mxu0  ;;  %v182_v28 = vrot.slane %v169_v16, 7 }
 0x12f   :  { %v192_v29 = vadd.f32 %v176_v17, %v79_v12  ;;  %v193_v30 = vadd.f32 %v177_v18, %v80_v13  ;;  %v194_v31 = vadd.f32 %v178_v19, %v81_v14  ;;  %v1259_v32 = vpop.f32.mrb[3].mxu0  ;;  %v195_v33 = vadd.f32 %v179_v20, %v82_v15  ;;  %v219_v26 = vld [vmem:[#allocation3 + $0x21] sm:$0x1] }
 0x130   :  { %1418 = vtanh.f32 %v191_v25  ;;  %v196_v35 = vadd.f32 %v180_v23, %v83_v22  ;;  %v197_v36 = vadd.f32 %v181_v24, %v84_v27  ;;  %v198_v37 = vadd.f32 %v182_v28, %v85_v34  ;;  %v215_v22 = vld [vmem:[#allocation3 + $0x1] sm:$0x1]  ;;  %v216_v23 = vld [vmem:[#allocation3 + $0x9] sm:$0x1]  ;;  %v217_v24 = vld [vmem:[#allocation3 + $0x11] sm:$0x1] }
 0x131   :  { %1420 = vtanh.f32 %v192_v29  ;;  %v218_v25 = vld [vmem:[#allocation3 + $0x19] sm:$0x1] }
 0x132   :  { %1422 = vtanh.f32 %v193_v30 }
 0x133   :  { %1424 = vtanh.f32 %v194_v31 }
 0x134   :  { %1426 = vtanh.f32 %v195_v33  ;;  %v220_v33 = vld [vmem:[#allocation3 + $0x29] sm:$0x1] }
 0x135   :  { %1428 = vtanh.f32 %v196_v35 }
 0x136   :  { %1430 = vtanh.f32 %v197_v36 }
 0x137   :  { %1432 = vtanh.f32 %v198_v37 }
 0x13a   :  { %v1419_v38 = vpop.eup %1418 }
 0x13b   :  { %v1421_v39 = vpop.eup %1420  ;;  %207 = vst [vmem:[#allocation9] sm:$0x1] %v1419_v38  ;;  %v223_v41 = vpack.c.bf16 %v1419_v38, %v1419_v38  ;;  %v221_v38 = vld [vmem:[#allocation3 + $0x31] sm:$0x1] }
 0x13c   :  { %v1423_v40 = vpop.eup %1422  ;;  %208 = vst [vmem:[#allocation9 + $0x8] sm:$0x1] %v1421_v39  ;;  %v224_v42 = vpack.c.bf16 %v1421_v39, %v1421_v39 }
 0x13d   :  { %v1425_v43 = vpop.eup %1424  ;;  %209 = vst [vmem:[#allocation9 + $0x10] sm:$0x1] %v1423_v40  ;;  %v225_v44 = vpack.c.bf16 %v1423_v40, %v1423_v40  ;;  %v239_v53 = vunpack.c.l.b16 %v223_v41 }
 0x13e   :  { %v1427_v45 = vpop.eup %1426  ;;  %210 = vst [vmem:[#allocation9 + $0x18] sm:$0x1] %v1425_v43  ;;  %v226_v46 = vpack.c.bf16 %v1425_v43, %v1425_v43  ;;  %v240_v47 = vunpack.c.l.b16 %v224_v42 }
 0x13f   :  { %v1429_v48 = vpop.eup %1428  ;;  %211 = vst [vmem:[#allocation9 + $0x20] sm:$0x1] %v1427_v45  ;;  %v227_v49 = vpack.c.bf16 %v1427_v45, %v1427_v45  ;;  %v241_v50 = vunpack.c.l.b16 %v225_v44  ;;  %v222_v44 = vld [vmem:[#allocation3 + $0x39] sm:$0x1] }
 0x140   :  { %v1431_v51 = vpop.eup %1430  ;;  %212 = vst [vmem:[#allocation9 + $0x28] sm:$0x1] %v1429_v48  ;;  %v228_v52 = vpack.c.bf16 %v1429_v48, %v1429_v48  ;;  %v242_v54 = vunpack.c.l.b16 %v226_v46  ;;  %v247_v55 = vrot.slane %v240_v47, 7 }
 0x141   :  { %v1433_v56 = vpop.eup %1432  ;;  %213 = vst [vmem:[#allocation9 + $0x30] sm:$0x1] %v1431_v51  ;;  %v229_v57 = vpack.c.bf16 %v1431_v51, %v1431_v51  ;;  %v243_v58 = vunpack.c.l.b16 %v227_v49  ;;  %v250_v59 = vrot.slane %v241_v50, 6 }
 0x142   :  { %214 = vst [vmem:[#allocation9 + $0x38] sm:$0x1] %v1433_v56  ;;  %v230_v60 = vpack.c.bf16 %v1433_v56, %v1433_v56  ;;  %v244_v61 = vunpack.c.l.b16 %v228_v52  ;;  %v249_v62 = vsel %vm248_vm1, %v247_v55, %v239_v53  ;;  %v253_v63 = vrot.slane %v242_v54, 5 }
 0x143   :  { %v245_v9 = vunpack.c.l.b16 %v229_v57  ;;  %v252_v10 = vsel %vm251_vm2, %v250_v59, %v249_v62  ;;  %v256_v11 = vrot.slane %v243_v58, 4 }
 0x144   :  { %v246_v12 = vunpack.c.l.b16 %v230_v60  ;;  %v255_v13 = vsel %vm254_vm3, %v253_v63, %v252_v10  ;;  %v259_v14 = vrot.slane %v244_v61, 3 }
 0x145   :  { %v258_v15 = vsel %vm257_vm4, %v256_v11, %v255_v13  ;;  %v262_v16 = vrot.slane %v245_v9, 2 }
 0x146   :  { %v261_v17 = vsel %vm260_vm5, %v259_v14, %v258_v15  ;;  %v265_v18 = vrot.slane %v246_v12, 1 }
 0x147   :  { %v264_v19 = vsel %vm263_vm6, %v262_v16, %v261_v17 }
 0x148   :  { %v267_v20 = vsel %vm266_vm7, %v265_v18, %v264_v19 }
 0x149   :  { %v268_v21 = vpack.c.b16 %v267_v20, %v267_v20 }
 0x14b   :  { %1277 = vmatmul.mubr.bf16.vlgmr.msra.gmra.mrb[0].mxu1 %v268_v21 }
 0x14c   :  { %1301 = vmatpush3.bf16.msra.mxu1 %v1723_v1  ;;  %1316 = vmatprep.mubr.msk.bf16.mxu1 %vm1656_vm0, %v1655_v0 }
 0x14d   :  { %1302 = vmatprep.subr.bf16.mxu1 %v1655_v0 }
 0x150   :  { %1303 = vmatpush3.bf16.msra.mxu1 %v1726_v2 }
 0x151   :  { %1304 = vmatprep.subr.bf16.mxu1 %v1655_v0 }
 0x154   :  { %1305 = vmatpush3.bf16.msra.mxu1 %v1732_v3 }
 0x155   :  { %1306 = vmatprep.subr.bf16.mxu1 %v1655_v0 }
 0x158   :  { %1307 = vmatpush3.bf16.msra.mxu1 %v1738_v4 }
 0x159   :  { %1308 = vmatprep.subr.bf16.mxu1 %v1655_v0 }
 0x15c   :  { %1309 = vmatpush3.bf16.msra.mxu1 %v1744_v5 }
 0x15d   :  { %1310 = vmatprep.subr.bf16.mxu1 %v1655_v0 }
 0x160   :  { %1311 = vmatpush3.bf16.msra.mxu1 %v1750_v6 }
 0x161   :  { %1312 = vmatprep.subr.bf16.mxu1 %v1655_v0 }
 0x164   :  { %1313 = vmatpush3.bf16.msra.mxu1 %v1756_v7 }
 0x165   :  { %1314 = vmatprep.subr.bf16.mxu1 %v1655_v0 }
 0x168   :  { %1315 = vmatpush3.bf16.msra.mxu1 %v1762_v8 }
 0x169   :  { %1340 = vmatprep.subr.bf16.mxu1 %v1655_v0 }
 0x21e   :  { %v304_v27 = vpop.f32.mrb[0].mxu1 }
 0x21f   :  { %v311_v28 = vrot.slane %v304_v27, 1  ;;  %v312_v29 = vrot.slane %v304_v27, 2  ;;  %v313_v30 = vrot.slane %v304_v27, 3  ;;  %v314_v31 = vrot.slane %v304_v27, 4  ;;  %v1278_v32 = vpop.f32.mrb[1].mxu1 }
 0x220   :  { %v315_v34 = vrot.slane %v304_v27, 5  ;;  %v316_v35 = vrot.slane %v304_v27, 6  ;;  %v326_v36 = vadd.f32 %v304_v27, %v215_v22  ;;  %v307_v37 = vpop.f32.mrb[2].mxu1  ;;  %v317_v39 = vrot.slane %v304_v27, 7 }
 0x221   :  { %v327_v40 = vadd.f32 %v311_v28, %v216_v23  ;;  %v328_v41 = vadd.f32 %v312_v29, %v217_v24  ;;  %v329_v42 = vadd.f32 %v313_v30, %v218_v25  ;;  %v1279_v43 = vpop.f32.mrb[3].mxu1  ;;  %v330_v45 = vadd.f32 %v314_v31, %v219_v26  ;;  %v354_v37 = vld [vmem:[#allocation3 + $0x22] sm:$0x1] }
 0x222   :  { %1434 = vtanh.f32 %v326_v36  ;;  %v331_v46 = vadd.f32 %v315_v34, %v220_v33  ;;  %v332_v47 = vadd.f32 %v316_v35, %v221_v38  ;;  %v333_v48 = vadd.f32 %v317_v39, %v222_v44  ;;  %v350_v33 = vld [vmem:[#allocation3 + $0x2] sm:$0x1]  ;;  %v351_v34 = vld [vmem:[#allocation3 + $0xa] sm:$0x1]  ;;  %v352_v35 = vld [vmem:[#allocation3 + $0x12] sm:$0x1] }
 0x223   :  { %1436 = vtanh.f32 %v327_v40  ;;  %v353_v36 = vld [vmem:[#allocation3 + $0x1a] sm:$0x1]  ;;  %v355_v44 = vld [vmem:[#allocation3 + $0x2a] sm:$0x1] }
 0x224   :  { %1438 = vtanh.f32 %v328_v41 }
 0x225   :  { %1440 = vtanh.f32 %v329_v42 }
 0x226   :  { %1442 = vtanh.f32 %v330_v45 }
 0x227   :  { %1444 = vtanh.f32 %v331_v46 }
 0x228   :  { %1446 = vtanh.f32 %v332_v47 }
 0x229   :  { %1448 = vtanh.f32 %v333_v48 }
 0x22c   :  { %v1435_v49 = vpop.eup %1434 }
 0x22d   :  { %v1437_v50 = vpop.eup %1436  ;;  %342 = vst [vmem:[#allocation9 + $0x1] sm:$0x1] %v1435_v49  ;;  %v358_v52 = vpack.c.bf16 %v1435_v49, %v1435_v49  ;;  %v356_v49 = vld [vmem:[#allocation3 + $0x32] sm:$0x1] }
 0x22e   :  { %v1439_v51 = vpop.eup %1438  ;;  %343 = vst [vmem:[#allocation9 + $0x9] sm:$0x1] %v1437_v50  ;;  %v359_v53 = vpack.c.bf16 %v1437_v50, %v1437_v50 }
 0x22f   :  { %v1441_v54 = vpop.eup %1440  ;;  %344 = vst [vmem:[#allocation9 + $0x11] sm:$0x1] %v1439_v51  ;;  %v360_v55 = vpack.c.bf16 %v1439_v51, %v1439_v51  ;;  %v374_v9 = vunpack.c.l.b16 %v358_v52 }
 0x230   :  { %v1443_v56 = vpop.eup %1442  ;;  %345 = vst [vmem:[#allocation9 + $0x19] sm:$0x1] %v1441_v54  ;;  %v361_v57 = vpack.c.bf16 %v1441_v54, %v1441_v54  ;;  %v375_v58 = vunpack.c.l.b16 %v359_v53 }
 0x231   :  { %v1445_v59 = vpop.eup %1444  ;;  %346 = vst [vmem:[#allocation9 + $0x21] sm:$0x1] %v1443_v56  ;;  %v362_v60 = vpack.c.bf16 %v1443_v56, %v1443_v56  ;;  %v376_v61 = vunpack.c.l.b16 %v360_v55  ;;  %v357_v55 = vld [vmem:[#allocation3 + $0x3a] sm:$0x1] }
 0x232   :  { %v1447_v62 = vpop.eup %1446  ;;  %347 = vst [vmem:[#allocation9 + $0x29] sm:$0x1] %v1445_v59  ;;  %v363_v63 = vpack.c.bf16 %v1445_v59, %v1445_v59  ;;  %v377_v10 = vunpack.c.l.b16 %v361_v57  ;;  %v382_v11 = vrot.slane %v375_v58, 7 }
 0x233   :  { %v1449_v12 = vpop.eup %1448  ;;  %348 = vst [vmem:[#allocation9 + $0x31] sm:$0x1] %v1447_v62  ;;  %v364_v13 = vpack.c.bf16 %v1447_v62, %v1447_v62  ;;  %v378_v14 = vunpack.c.l.b16 %v362_v60  ;;  %v384_v15 = vrot.slane %v376_v61, 6 }
 0x234   :  { %349 = vst [vmem:[#allocation9 + $0x39] sm:$0x1] %v1449_v12  ;;  %v365_v16 = vpack.c.bf16 %v1449_v12, %v1449_v12  ;;  %v379_v17 = vunpack.c.l.b16 %v363_v63  ;;  %v383_v18 = vsel %vm248_vm1, %v382_v11, %v374_v9  ;;  %v386_v19 = vrot.slane %v377_v10, 5 }
 0x235   :  { %v380_v20 = vunpack.c.l.b16 %v364_v13  ;;  %v385_v21 = vsel %vm251_vm2, %v384_v15, %v383_v18  ;;  %v388_v22 = vrot.slane %v378_v14, 4 }
 0x236   :  { %v381_v23 = vunpack.c.l.b16 %v365_v16  ;;  %v387_v24 = vsel %vm254_vm3, %v386_v19, %v385_v21  ;;  %v390_v25 = vrot.slane %v379_v17, 3 }
 0x237   :  { %v389_v26 = vsel %vm257_vm4, %v388_v22, %v387_v24  ;;  %v392_v27 = vrot.slane %v380_v20, 2 }
 0x238   :  { %v391_v28 = vsel %vm260_vm5, %v390_v25, %v389_v26  ;;  %v394_v29 = vrot.slane %v381_v23, 1 }
 0x239   :  { %v393_v30 = vsel %vm263_vm6, %v392_v27, %v391_v28 }
 0x23a   :  { %v395_v31 = vsel %vm266_vm7, %v394_v29, %v393_v30 }
 0x23b   :  { %v396_v32 = vpack.c.b16 %v395_v31, %v395_v31 }
 0x23d   :  { %1297 = vmatmul.mubr.bf16.vlgmr.msra.gmra.mrb[4].mxu0 %v396_v32 }
 0x23e   :  { %1321 = vmatpush3.bf16.msra.mxu0 %v1723_v1  ;;  %1336 = vmatprep.mubr.msk.bf16.mxu0 %vm1656_vm0, %v1655_v0 }
 0x23f   :  { %1322 = vmatprep.subr.bf16.mxu0 %v1655_v0 }
 0x242   :  { %1323 = vmatpush3.bf16.msra.mxu0 %v1726_v2 }
 0x243   :  { %1324 = vmatprep.subr.bf16.mxu0 %v1655_v0 }
 0x246   :  { %1325 = vmatpush3.bf16.msra.mxu0 %v1732_v3 }
 0x247   :  { %1326 = vmatprep.subr.bf16.mxu0 %v1655_v0 }
 0x24a   :  { %1327 = vmatpush3.bf16.msra.mxu0 %v1738_v4 }
 0x24b   :  { %1328 = vmatprep.subr.bf16.mxu0 %v1655_v0 }
 0x24e   :  { %1329 = vmatpush3.bf16.msra.mxu0 %v1744_v5 }
 0x24f   :  { %1330 = vmatprep.subr.bf16.mxu0 %v1655_v0 }
 0x252   :  { %1331 = vmatpush3.bf16.msra.mxu0 %v1750_v6 }
 0x253   :  { %1332 = vmatprep.subr.bf16.mxu0 %v1655_v0 }
 0x256   :  { %1333 = vmatpush3.bf16.msra.mxu0 %v1756_v7 }
 0x257   :  { %1334 = vmatprep.subr.bf16.mxu0 %v1655_v0 }
 0x25a   :  { %1335 = vmatpush3.bf16.msra.mxu0 %v1762_v8 }
 0x25b   :  { %1360 = vmatprep.subr.bf16.mxu0 %v1655_v0 }
 0x310   :  { %v432_v38 = vpop.f32.mrb[4].mxu0 }
 0x311   :  { %v439_v39 = vrot.slane %v432_v38, 1  ;;  %v440_v40 = vrot.slane %v432_v38, 2  ;;  %v441_v41 = vrot.slane %v432_v38, 3  ;;  %v442_v42 = vrot.slane %v432_v38, 4  ;;  %v1298_v43 = vpop.f32.mrb[5].mxu0 }
 0x312   :  { %v443_v45 = vrot.slane %v432_v38, 5  ;;  %v444_v46 = vrot.slane %v432_v38, 6  ;;  %v454_v47 = vadd.f32 %v432_v38, %v350_v33  ;;  %v435_v48 = vpop.f32.mrb[6].mxu0  ;;  %v445_v50 = vrot.slane %v432_v38, 7 }
 0x313   :  { %v455_v51 = vadd.f32 %v439_v39, %v351_v34  ;;  %v456_v52 = vadd.f32 %v440_v40, %v352_v35  ;;  %v457_v53 = vadd.f32 %v441_v41, %v353_v36  ;;  %v1299_v54 = vpop.f32.mrb[7].mxu0  ;;  %v458_v56 = vadd.f32 %v442_v42, %v354_v37  ;;  %v482_v48 = vld [vmem:[#allocation3 + $0x23] sm:$0x1] }
 0x314   :  { %1450 = vtanh.f32 %v454_v47  ;;  %v459_v57 = vadd.f32 %v443_v45, %v355_v44  ;;  %v460_v58 = vadd.f32 %v444_v46, %v356_v49  ;;  %v461_v59 = vadd.f32 %v445_v50, %v357_v55  ;;  %v478_v44 = vld [vmem:[#allocation3 + $0x3] sm:$0x1]  ;;  %v479_v45 = vld [vmem:[#allocation3 + $0xb] sm:$0x1]  ;;  %v480_v46 = vld [vmem:[#allocation3 + $0x13] sm:$0x1] }
 0x315   :  { %1452 = vtanh.f32 %v455_v51  ;;  %v481_v47 = vld [vmem:[#allocation3 + $0x1b] sm:$0x1]  ;;  %v483_v55 = vld [vmem:[#allocation3 + $0x2b] sm:$0x1] }
 0x316   :  { %1454 = vtanh.f32 %v456_v52 }
 0x317   :  { %1456 = vtanh.f32 %v457_v53 }
 0x318   :  { %1458 = vtanh.f32 %v458_v56 }
 0x319   :  { %1460 = vtanh.f32 %v459_v57 }
 0x31a   :  { %1462 = vtanh.f32 %v460_v58 }
 0x31b   :  { %1464 = vtanh.f32 %v461_v59 }
 0x31e   :  { %v1451_v60 = vpop.eup %1450 }
 0x31f   :  { %v1453_v61 = vpop.eup %1452  ;;  %470 = vst [vmem:[#allocation9 + $0x2] sm:$0x1] %v1451_v60  ;;  %v486_v63 = vpack.c.bf16 %v1451_v60, %v1451_v60  ;;  %v484_v60 = vld [vmem:[#allocation3 + $0x33] sm:$0x1] }
 0x320   :  { %v1455_v62 = vpop.eup %1454  ;;  %471 = vst [vmem:[#allocation9 + $0xa] sm:$0x1] %v1453_v61  ;;  %v487_v9 = vpack.c.bf16 %v1453_v61, %v1453_v61 }
 0x321   :  { %v1457_v10 = vpop.eup %1456  ;;  %472 = vst [vmem:[#allocation9 + $0x12] sm:$0x1] %v1455_v62  ;;  %v488_v11 = vpack.c.bf16 %v1455_v62, %v1455_v62  ;;  %v502_v20 = vunpack.c.l.b16 %v486_v63 }
 0x322   :  { %v1459_v12 = vpop.eup %1458  ;;  %473 = vst [vmem:[#allocation9 + $0x1a] sm:$0x1] %v1457_v10  ;;  %v489_v13 = vpack.c.bf16 %v1457_v10, %v1457_v10  ;;  %v503_v14 = vunpack.c.l.b16 %v487_v9 }
 0x323   :  { %v1461_v15 = vpop.eup %1460  ;;  %474 = vst [vmem:[#allocation9 + $0x22] sm:$0x1] %v1459_v12  ;;  %v490_v16 = vpack.c.bf16 %v1459_v12, %v1459_v12  ;;  %v504_v17 = vunpack.c.l.b16 %v488_v11  ;;  %v485_v11 = vld [vmem:[#allocation3 + $0x3b] sm:$0x1] }
 0x324   :  { %v1463_v18 = vpop.eup %1462  ;;  %475 = vst [vmem:[#allocation9 + $0x2a] sm:$0x1] %v1461_v15  ;;  %v491_v19 = vpack.c.bf16 %v1461_v15, %v1461_v15  ;;  %v505_v21 = vunpack.c.l.b16 %v489_v13  ;;  %v510_v22 = vrot.slane %v503_v14, 7 }
 0x325   :  { %v1465_v23 = vpop.eup %1464  ;;  %476 = vst [vmem:[#allocation9 + $0x32] sm:$0x1] %v1463_v18  ;;  %v492_v24 = vpack.c.bf16 %v1463_v18, %v1463_v18  ;;  %v506_v25 = vunpack.c.l.b16 %v490_v16  ;;  %v512_v26 = vrot.slane %v504_v17, 6 }
 0x326   :  { %477 = vst [vmem:[#allocation9 + $0x3a] sm:$0x1] %v1465_v23  ;;  %v493_v27 = vpack.c.bf16 %v1465_v23, %v1465_v23  ;;  %v507_v28 = vunpack.c.l.b16 %v491_v19  ;;  %v511_v29 = vsel %vm248_vm1, %v510_v22, %v502_v20  ;;  %v514_v30 = vrot.slane %v505_v21, 5 }
 0x327   :  { %v508_v31 = vunpack.c.l.b16 %v492_v24  ;;  %v513_v32 = vsel %vm251_vm2, %v512_v26, %v511_v29  ;;  %v516_v33 = vrot.slane %v506_v25, 4 }
 0x328   :  { %v509_v34 = vunpack.c.l.b16 %v493_v27  ;;  %v515_v35 = vsel %vm254_vm3, %v514_v30, %v513_v32  ;;  %v518_v36 = vrot.slane %v507_v28, 3 }
 0x329   :  { %v517_v37 = vsel %vm257_vm4, %v516_v33, %v515_v35  ;;  %v520_v38 = vrot.slane %v508_v31, 2 }
 0x32a   :  { %v519_v39 = vsel %vm260_vm5, %v518_v36, %v517_v37  ;;  %v522_v40 = vrot.slane %v509_v34, 1 }
 0x32b   :  { %v521_v41 = vsel %vm263_vm6, %v520_v38, %v519_v39 }
 0x32c   :  { %v523_v42 = vsel %vm266_vm7, %v522_v40, %v521_v41 }
 0x32d   :  { %v524_v43 = vpack.c.b16 %v523_v42, %v523_v42 }
 0x32f   :  { %1317 = vmatmul.mubr.bf16.vlgmr.msra.gmra.mrb[4].mxu1 %v524_v43 }
 0x330   :  { %1341 = vmatpush3.bf16.msra.mxu1 %v1723_v1  ;;  %1356 = vmatprep.mubr.msk.bf16.mxu1 %vm1656_vm0, %v1655_v0 }
 0x331   :  { %1342 = vmatprep.subr.bf16.mxu1 %v1655_v0 }
 0x334   :  { %1343 = vmatpush3.bf16.msra.mxu1 %v1726_v2 }
 0x335   :  { %1344 = vmatprep.subr.bf16.mxu1 %v1655_v0 }
 0x338   :  { %1345 = vmatpush3.bf16.msra.mxu1 %v1732_v3 }
 0x339   :  { %1346 = vmatprep.subr.bf16.mxu1 %v1655_v0 }
 0x33c   :  { %1347 = vmatpush3.bf16.msra.mxu1 %v1738_v4 }
 0x33d   :  { %1348 = vmatprep.subr.bf16.mxu1 %v1655_v0 }
 0x340   :  { %1349 = vmatpush3.bf16.msra.mxu1 %v1744_v5 }
 0x341   :  { %1350 = vmatprep.subr.bf16.mxu1 %v1655_v0 }
 0x344   :  { %1351 = vmatpush3.bf16.msra.mxu1 %v1750_v6 }
 0x345   :  { %1352 = vmatprep.subr.bf16.mxu1 %v1655_v0 }
 0x348   :  { %1353 = vmatpush3.bf16.msra.mxu1 %v1756_v7 }
 0x349   :  { %1354 = vmatprep.subr.bf16.mxu1 %v1655_v0 }
 0x34c   :  { %1355 = vmatpush3.bf16.msra.mxu1 %v1762_v8 }
 0x34d   :  { %1380 = vmatprep.subr.bf16.mxu1 %v1655_v0 }
 0x402   :  { %v560_v49 = vpop.f32.mrb[4].mxu1 }
 0x403   :  { %v567_v50 = vrot.slane %v560_v49, 1  ;;  %v568_v51 = vrot.slane %v560_v49, 2  ;;  %v569_v52 = vrot.slane %v560_v49, 3  ;;  %v570_v53 = vrot.slane %v560_v49, 4  ;;  %v1318_v54 = vpop.f32.mrb[5].mxu1 }
 0x404   :  { %v571_v56 = vrot.slane %v560_v49, 5  ;;  %v572_v57 = vrot.slane %v560_v49, 6  ;;  %v582_v58 = vadd.f32 %v560_v49, %v478_v44  ;;  %v563_v59 = vpop.f32.mrb[6].mxu1  ;;  %v573_v61 = vrot.slane %v560_v49, 7 }
 0x405   :  { %v583_v62 = vadd.f32 %v567_v50, %v479_v45  ;;  %v584_v63 = vadd.f32 %v568_v51, %v480_v46  ;;  %v585_v9 = vadd.f32 %v569_v52, %v481_v47  ;;  %v1319_v10 = vpop.f32.mrb[7].mxu1  ;;  %v586_v12 = vadd.f32 %v570_v53, %v482_v48 }
 0x406   :  { %1466 = vtanh.f32 %v582_v58  ;;  %v587_v13 = vadd.f32 %v571_v56, %v483_v55  ;;  %v588_v14 = vadd.f32 %v572_v57, %v484_v60  ;;  %v589_v15 = vadd.f32 %v573_v61, %v485_v11  ;;  %v610_v55 = vld [vmem:[#allocation3 + $0x24] sm:$0x1] }
 0x407   :  { %1468 = vtanh.f32 %v583_v62 }
 0x408   :  { %1470 = vtanh.f32 %v584_v63 }
 0x409   :  { %1472 = vtanh.f32 %v585_v9  ;;  %v612_v9 = vld [vmem:[#allocation3 + $0x34] sm:$0x1] }
 0x40a   :  { %1474 = vtanh.f32 %v586_v12 }
 0x40b   :  { %1476 = vtanh.f32 %v587_v13 }
 0x40c   :  { %1478 = vtanh.f32 %v588_v14  ;;  %v613_v14 = vld [vmem:[#allocation3 + $0x3c] sm:$0x1] }
 0x40d   :  { %1480 = vtanh.f32 %v589_v15 }
 0x410   :  { %v1467_v16 = vpop.eup %1466 }
 0x411   :  { %v1469_v17 = vpop.eup %1468  ;;  %598 = vst [vmem:[#allocation9 + $0x3] sm:$0x1] %v1467_v16  ;;  %v614_v19 = vpack.c.bf16 %v1467_v16, %v1467_v16 }
 0x412   :  { %v1471_v18 = vpop.eup %1470  ;;  %599 = vst [vmem:[#allocation9 + $0xb] sm:$0x1] %v1469_v17  ;;  %v615_v20 = vpack.c.bf16 %v1469_v17, %v1469_v17 }
 0x413   :  { %v1473_v21 = vpop.eup %1472  ;;  %600 = vst [vmem:[#allocation9 + $0x13] sm:$0x1] %v1471_v18  ;;  %v616_v22 = vpack.c.bf16 %v1471_v18, %v1471_v18  ;;  %v630_v31 = vunpack.c.l.b16 %v614_v19 }
 0x414   :  { %v1475_v23 = vpop.eup %1474  ;;  %601 = vst [vmem:[#allocation9 + $0x1b] sm:$0x1] %v1473_v21  ;;  %v617_v24 = vpack.c.bf16 %v1473_v21, %v1473_v21  ;;  %v631_v25 = vunpack.c.l.b16 %v615_v20 }
 0x415   :  { %v1477_v26 = vpop.eup %1476  ;;  %602 = vst [vmem:[#allocation9 + $0x23] sm:$0x1] %v1475_v23  ;;  %v618_v27 = vpack.c.bf16 %v1475_v23, %v1475_v23  ;;  %v632_v28 = vunpack.c.l.b16 %v616_v22 }
 0x416   :  { %v1479_v29 = vpop.eup %1478  ;;  %603 = vst [vmem:[#allocation9 + $0x2b] sm:$0x1] %v1477_v26  ;;  %v619_v30 = vpack.c.bf16 %v1477_v26, %v1477_v26  ;;  %v633_v32 = vunpack.c.l.b16 %v617_v24  ;;  %v638_v33 = vrot.slane %v631_v25, 7 }
 0x417   :  { %v1481_v34 = vpop.eup %1480  ;;  %604 = vst [vmem:[#allocation9 + $0x33] sm:$0x1] %v1479_v29  ;;  %v620_v35 = vpack.c.bf16 %v1479_v29, %v1479_v29  ;;  %v634_v36 = vunpack.c.l.b16 %v618_v27  ;;  %v640_v37 = vrot.slane %v632_v28, 6 }
 0x418   :  { %605 = vst [vmem:[#allocation9 + $0x3b] sm:$0x1] %v1481_v34  ;;  %v621_v38 = vpack.c.bf16 %v1481_v34, %v1481_v34  ;;  %v635_v39 = vunpack.c.l.b16 %v619_v30  ;;  %v639_v40 = vsel %vm248_vm1, %v638_v33, %v630_v31  ;;  %v642_v41 = vrot.slane %v633_v32, 5 }
 0x419   :  { %v636_v42 = vunpack.c.l.b16 %v620_v35  ;;  %v641_v43 = vsel %vm251_vm2, %v640_v37, %v639_v40  ;;  %v644_v44 = vrot.slane %v634_v36, 4 }
 0x41a   :  { %v637_v45 = vunpack.c.l.b16 %v621_v38  ;;  %v643_v46 = vsel %vm254_vm3, %v642_v41, %v641_v43  ;;  %v646_v47 = vrot.slane %v635_v39, 3 }
 0x41b   :  { %v645_v48 = vsel %vm257_vm4, %v644_v44, %v643_v46  ;;  %v648_v49 = vrot.slane %v636_v42, 2 }
 0x41c   :  { %v647_v50 = vsel %vm260_vm5, %v646_v47, %v645_v48  ;;  %v650_v51 = vrot.slane %v637_v45, 1 }
 0x41d   :  { %v649_v52 = vsel %vm263_vm6, %v648_v49, %v647_v50 }
 0x41e   :  { %v651_v53 = vsel %vm266_vm7, %v650_v51, %v649_v52 }
 0x41f   :  { %v652_v54 = vpack.c.b16 %v651_v53, %v651_v53 }
 0x421   :  { %1337 = vmatmul.mubr.bf16.vlgmr.msra.gmra.mrb[8].mxu0 %v652_v54 }
 0x422   :  { %1361 = vmatpush3.bf16.msra.mxu0 %v1723_v1  ;;  %1376 = vmatprep.mubr.msk.bf16.mxu0 %vm1656_vm0, %v1655_v0  ;;  %v606_v1 = vld [vmem:[#allocation3 + $0x4] sm:$0x1] }
 0x423   :  { %1362 = vmatprep.subr.bf16.mxu0 %v1655_v0 }
 0x426   :  { %1363 = vmatpush3.bf16.msra.mxu0 %v1726_v2  ;;  %v607_v2 = vld [vmem:[#allocation3 + $0xc] sm:$0x1] }
 0x427   :  { %1364 = vmatprep.subr.bf16.mxu0 %v1655_v0 }
 0x42a   :  { %1365 = vmatpush3.bf16.msra.mxu0 %v1732_v3  ;;  %v608_v3 = vld [vmem:[#allocation3 + $0x14] sm:$0x1] }
 0x42b   :  { %1366 = vmatprep.subr.bf16.mxu0 %v1655_v0 }
 0x42e   :  { %1367 = vmatpush3.bf16.msra.mxu0 %v1738_v4  ;;  %v609_v4 = vld [vmem:[#allocation3 + $0x1c] sm:$0x1] }
 0x42f   :  { %1368 = vmatprep.subr.bf16.mxu0 %v1655_v0 }
 0x432   :  { %1369 = vmatpush3.bf16.msra.mxu0 %v1744_v5 }
 0x433   :  { %1370 = vmatprep.subr.bf16.mxu0 %v1655_v0 }
 0x436   :  { %1371 = vmatpush3.bf16.msra.mxu0 %v1750_v6  ;;  %v611_v6 = vld [vmem:[#allocation3 + $0x2c] sm:$0x1] }
 0x437   :  { %1372 = vmatprep.subr.bf16.mxu0 %v1655_v0 }
 0x43a   :  { %1373 = vmatpush3.bf16.msra.mxu0 %v1756_v7 }
 0x43b   :  { %1374 = vmatprep.subr.bf16.mxu0 %v1655_v0 }
 0x43e   :  { %1375 = vmatpush3.bf16.msra.mxu0 %v1762_v8 }
 0x4f4   :  { %v688_v56 = vpop.f32.mrb[8].mxu0 }
 0x4f5   :  { %v695_v57 = vrot.slane %v688_v56, 1  ;;  %v696_v5 = vrot.slane %v688_v56, 2  ;;  %v697_v58 = vrot.slane %v688_v56, 3  ;;  %v698_v59 = vrot.slane %v688_v56, 4  ;;  %v1338_v60 = vpop.f32.mrb[9].mxu0 }
 0x4f6   :  { %v699_v61 = vrot.slane %v688_v56, 5  ;;  %v700_v62 = vrot.slane %v688_v56, 6  ;;  %v710_v63 = vadd.f32 %v688_v56, %v606_v1  ;;  %v691_v7 = vpop.f32.mrb[10].mxu0  ;;  %v701_v10 = vrot.slane %v688_v56, 7  ;;  %v1548_v56 = vld [vmem:[#allocation6 + $0x10] sm:$0xff]   ;;  %v1553_v60 = vld [vmem:[#allocation6 + $0x38] sm:$0xff]  }
 0x4f7   :  { %v711_v11 = vadd.f32 %v695_v57, %v607_v2  ;;  %v712_v8 = vadd.f32 %v696_v5, %v608_v3  ;;  %v713_v12 = vadd.f32 %v697_v58, %v609_v4  ;;  %v1339_v13 = vpop.f32.mrb[11].mxu0  ;;  %v714_v15 = vadd.f32 %v698_v59, %v610_v55  ;;  %v1546_v4 = vld [vmem:[#allocation6] sm:$0xff]   ;;  %v1547_v55 = vld [vmem:[#allocation6 + $0x8] sm:$0xff]   ;;  %v1549_v57 = vld [vmem:[#allocation6 + $0x18] sm:$0xff]  }
 0x4f8   :  { %1482 = vtanh.f32 %v710_v63  ;;  %v715_v16 = vadd.f32 %v699_v61, %v611_v6  ;;  %v716_v17 = vadd.f32 %v700_v62, %v612_v9  ;;  %v717_v18 = vadd.f32 %v701_v10, %v613_v14  ;;  %v1550_v5 = vld [vmem:[#allocation6 + $0x20] sm:$0xff]   ;;  %v1551_v58 = vld [vmem:[#allocation6 + $0x28] sm:$0xff]   ;;  %v1552_v59 = vld [vmem:[#allocation6 + $0x30] sm:$0xff]  }
 0x4f9   :  { %1484 = vtanh.f32 %v711_v11  ;;  %v734_v6 = vld [vmem:[#allocation3 + $0x5] sm:$0x1]  ;;  %v735_v61 = vld [vmem:[#allocation3 + $0xd] sm:$0x1]  ;;  %v736_v62 = vld [vmem:[#allocation3 + $0x15] sm:$0x1] }
 0x4fa   :  { %1486 = vtanh.f32 %v712_v8  ;;  %v737_v63 = vld [vmem:[#allocation3 + $0x1d] sm:$0x1]  ;;  %v738_v7 = vld [vmem:[#allocation3 + $0x25] sm:$0x1]  ;;  %v739_v14 = vld [vmem:[#allocation3 + $0x2d] sm:$0x1] }
 0x4fb   :  { %1488 = vtanh.f32 %v713_v12 }
 0x4fc   :  { %1490 = vtanh.f32 %v714_v15 }
 0x4fd   :  { %1492 = vtanh.f32 %v715_v16 }
 0x4fe   :  { %1494 = vtanh.f32 %v716_v17 }
 0x4ff   :  { %1496 = vtanh.f32 %v717_v18 }
 0x502   :  { %v1483_v19 = vpop.eup %1482 }
 0x503   :  { %v1485_v20 = vpop.eup %1484  ;;  %726 = vst [vmem:[#allocation9 + $0x4] sm:$0x1] %v1483_v19  ;;  %v742_v22 = vpack.c.bf16 %v1483_v19, %v1483_v19  ;;  %v740_v19 = vld [vmem:[#allocation3 + $0x35] sm:$0x1] }
 0x504   :  { %v1487_v21 = vpop.eup %1486  ;;  %727 = vst [vmem:[#allocation9 + $0xc] sm:$0x1] %v1485_v20  ;;  %v743_v23 = vpack.c.bf16 %v1485_v20, %v1485_v20 }
 0x505   :  { %v1489_v24 = vpop.eup %1488  ;;  %728 = vst [vmem:[#allocation9 + $0x14] sm:$0x1] %v1487_v21  ;;  %v744_v25 = vpack.c.bf16 %v1487_v21, %v1487_v21  ;;  %v758_v34 = vunpack.c.l.b16 %v742_v22 }
 0x506   :  { %v1491_v26 = vpop.eup %1490  ;;  %729 = vst [vmem:[#allocation9 + $0x1c] sm:$0x1] %v1489_v24  ;;  %v745_v27 = vpack.c.bf16 %v1489_v24, %v1489_v24  ;;  %v759_v28 = vunpack.c.l.b16 %v743_v23  ;;  %v741_v24 = vld [vmem:[#allocation3 + $0x3d] sm:$0x1] }
 0x507   :  { %v1493_v29 = vpop.eup %1492  ;;  %730 = vst [vmem:[#allocation9 + $0x24] sm:$0x1] %v1491_v26  ;;  %v746_v30 = vpack.c.bf16 %v1491_v26, %v1491_v26  ;;  %v760_v31 = vunpack.c.l.b16 %v744_v25 }
 0x508   :  { %v1495_v32 = vpop.eup %1494  ;;  %731 = vst [vmem:[#allocation9 + $0x2c] sm:$0x1] %v1493_v29  ;;  %v747_v33 = vpack.c.bf16 %v1493_v29, %v1493_v29  ;;  %v761_v35 = vunpack.c.l.b16 %v745_v27  ;;  %v766_v36 = vrot.slane %v759_v28, 7 }
 0x509   :  { %v1497_v37 = vpop.eup %1496  ;;  %732 = vst [vmem:[#allocation9 + $0x34] sm:$0x1] %v1495_v32  ;;  %v748_v38 = vpack.c.bf16 %v1495_v32, %v1495_v32  ;;  %v762_v39 = vunpack.c.l.b16 %v746_v30  ;;  %v768_v40 = vrot.slane %v760_v31, 6 }
 0x50a   :  { %733 = vst [vmem:[#allocation9 + $0x3c] sm:$0x1] %v1497_v37  ;;  %v749_v41 = vpack.c.bf16 %v1497_v37, %v1497_v37  ;;  %v763_v42 = vunpack.c.l.b16 %v747_v33  ;;  %v767_v43 = vsel %vm248_vm1, %v766_v36, %v758_v34  ;;  %v770_v44 = vrot.slane %v761_v35, 5 }
 0x50b   :  { %v764_v45 = vunpack.c.l.b16 %v748_v38  ;;  %v769_v46 = vsel %vm251_vm2, %v768_v40, %v767_v43  ;;  %v772_v47 = vrot.slane %v762_v39, 4 }
 0x50c   :  { %v765_v48 = vunpack.c.l.b16 %v749_v41  ;;  %v771_v49 = vsel %vm254_vm3, %v770_v44, %v769_v46  ;;  %v774_v50 = vrot.slane %v763_v42, 3 }
 0x50d   :  { %v773_v51 = vsel %vm257_vm4, %v772_v47, %v771_v49  ;;  %v776_v52 = vrot.slane %v764_v45, 2 }
 0x50e   :  { %v775_v53 = vsel %vm260_vm5, %v774_v50, %v773_v51  ;;  %v778_v54 = vrot.slane %v765_v48, 1 }
 0x50f   :  { %v777_v1 = vsel %vm263_vm6, %v776_v52, %v775_v53 }
 0x510   :  { %v779_v2 = vsel %vm266_vm7, %v778_v54, %v777_v1 }
 0x511   :  { %v780_v3 = vpack.c.b16 %v779_v2, %v779_v2 }
 0x513   :  { %1357 = vmatmul.mubr.bf16.vlgmr.msra.gmra.mrb[8].mxu1 %v780_v3 }
 0x514   :  { %1381 = vmatpush3.bf16.msra.mxu1 %v1546_v4  ;;  %1396 = vmatprep.mubr.msk.bf16.mxu1 %vm1656_vm0, %v1655_v0 }
 0x515   :  { %1382 = vmatprep.subr.bf16.mxu1 %v1655_v0 }
 0x518   :  { %1383 = vmatpush3.bf16.msra.mxu1 %v1547_v55 }
 0x519   :  { %1384 = vmatprep.subr.bf16.mxu1 %v1655_v0 }
 0x51c   :  { %1385 = vmatpush3.bf16.msra.mxu1 %v1548_v56 }
 0x51d   :  { %1386 = vmatprep.subr.bf16.mxu1 %v1655_v0 }
 0x520   :  { %1387 = vmatpush3.bf16.msra.mxu1 %v1549_v57 }
 0x521   :  { %1388 = vmatprep.subr.bf16.mxu1 %v1655_v0 }
 0x524   :  { %1389 = vmatpush3.bf16.msra.mxu1 %v1550_v5 }
 0x525   :  { %1390 = vmatprep.subr.bf16.mxu1 %v1655_v0 }
 0x528   :  { %1391 = vmatpush3.bf16.msra.mxu1 %v1551_v58 }
 0x529   :  { %1392 = vmatprep.subr.bf16.mxu1 %v1655_v0 }
 0x52c   :  { %1393 = vmatpush3.bf16.msra.mxu1 %v1552_v59 }
 0x52d   :  { %1394 = vmatprep.subr.bf16.mxu1 %v1655_v0 }
 0x530   :  { %1395 = vmatpush3.bf16.msra.mxu1 %v1553_v60 }
 0x5e6   :  { %v816_v9 = vpop.f32.mrb[8].mxu1 }
 0x5e7   :  { %v823_v10 = vrot.slane %v816_v9, 1  ;;  %v824_v11 = vrot.slane %v816_v9, 2  ;;  %v825_v8 = vrot.slane %v816_v9, 3  ;;  %v826_v12 = vrot.slane %v816_v9, 4  ;;  %v1358_v13 = vpop.f32.mrb[9].mxu1 }
 0x5e8   :  { %v827_v15 = vrot.slane %v816_v9, 5  ;;  %v828_v16 = vrot.slane %v816_v9, 6  ;;  %v838_v17 = vadd.f32 %v816_v9, %v734_v6  ;;  %v819_v18 = vpop.f32.mrb[10].mxu1  ;;  %v829_v0 = vrot.slane %v816_v9, 7  ;;  %v865_v9 = vld [vmem:[#allocation3 + $0x1e] sm:$0x1] }
 0x5e9   :  { %v839_v20 = vadd.f32 %v823_v10, %v735_v61  ;;  %v840_v21 = vadd.f32 %v824_v11, %v736_v62  ;;  %v841_v22 = vadd.f32 %v825_v8, %v737_v63  ;;  %v1359_v23 = vpop.f32.mrb[11].mxu1  ;;  %v842_v25 = vadd.f32 %v826_v12, %v738_v7  ;;  %v862_v62 = vld [vmem:[#allocation3 + $0x6] sm:$0x1]  ;;  %v863_v63 = vld [vmem:[#allocation3 + $0xe] sm:$0x1] }
 0x5ea   :  { %1498 = vtanh.f32 %v838_v17  ;;  %v843_v26 = vadd.f32 %v827_v15, %v739_v14  ;;  %v844_v27 = vadd.f32 %v828_v16, %v740_v19  ;;  %v845_v28 = vadd.f32 %v829_v0, %v741_v24  ;;  %v864_v7 = vld [vmem:[#allocation3 + $0x16] sm:$0x1]  ;;  %v866_v10 = vld [vmem:[#allocation3 + $0x26] sm:$0x1]  ;;  %v867_v16 = vld [vmem:[#allocation3 + $0x2e] sm:$0x1] }
 0x5eb   :  { %1500 = vtanh.f32 %v839_v20  ;;  %v868_v20 = vld [vmem:[#allocation3 + $0x36] sm:$0x1] }
 0x5ec   :  { %1502 = vtanh.f32 %v840_v21 }
 0x5ed   :  { %1504 = vtanh.f32 %v841_v22 }
 0x5ee   :  { %1506 = vtanh.f32 %v842_v25 }
 0x5ef   :  { %1508 = vtanh.f32 %v843_v26  ;;  %v869_v26 = vld [vmem:[#allocation3 + $0x3e] sm:$0x1] }
 0x5f0   :  { %1510 = vtanh.f32 %v844_v27 }
 0x5f1   :  { %1512 = vtanh.f32 %v845_v28 }
 0x5f4   :  { %v1499_v29 = vpop.eup %1498 }
 0x5f5   :  { %v1501_v30 = vpop.eup %1500  ;;  %854 = vst [vmem:[#allocation9 + $0x5] sm:$0x1] %v1499_v29  ;;  %v870_v32 = vpack.c.bf16 %v1499_v29, %v1499_v29 }
 0x5f6   :  { %v1503_v31 = vpop.eup %1502  ;;  %855 = vst [vmem:[#allocation9 + $0xd] sm:$0x1] %v1501_v30  ;;  %v871_v33 = vpack.c.bf16 %v1501_v30, %v1501_v30 }
 0x5f7   :  { %v1505_v34 = vpop.eup %1504  ;;  %856 = vst [vmem:[#allocation9 + $0x15] sm:$0x1] %v1503_v31  ;;  %v872_v35 = vpack.c.bf16 %v1503_v31, %v1503_v31  ;;  %v886_v44 = vunpack.c.l.b16 %v870_v32 }
 0x5f8   :  { %v1507_v36 = vpop.eup %1506  ;;  %857 = vst [vmem:[#allocation9 + $0x1d] sm:$0x1] %v1505_v34  ;;  %v873_v37 = vpack.c.bf16 %v1505_v34, %v1505_v34  ;;  %v887_v38 = vunpack.c.l.b16 %v871_v33 }
 0x5f9   :  { %v1509_v39 = vpop.eup %1508  ;;  %858 = vst [vmem:[#allocation9 + $0x25] sm:$0x1] %v1507_v36  ;;  %v874_v40 = vpack.c.bf16 %v1507_v36, %v1507_v36  ;;  %v888_v41 = vunpack.c.l.b16 %v872_v35 }
 0x5fa   :  { %v1511_v42 = vpop.eup %1510  ;;  %859 = vst [vmem:[#allocation9 + $0x2d] sm:$0x1] %v1509_v39  ;;  %v875_v43 = vpack.c.bf16 %v1509_v39, %v1509_v39  ;;  %v889_v45 = vunpack.c.l.b16 %v873_v37  ;;  %v894_v46 = vrot.slane %v887_v38, 7 }
 0x5fb   :  { %v1513_v47 = vpop.eup %1512  ;;  %860 = vst [vmem:[#allocation9 + $0x35] sm:$0x1] %v1511_v42  ;;  %v876_v48 = vpack.c.bf16 %v1511_v42, %v1511_v42  ;;  %v890_v49 = vunpack.c.l.b16 %v874_v40  ;;  %v896_v50 = vrot.slane %v888_v41, 6 }
 0x5fc   :  { %861 = vst [vmem:[#allocation9 + $0x3d] sm:$0x1] %v1513_v47  ;;  %v877_v51 = vpack.c.bf16 %v1513_v47, %v1513_v47  ;;  %v891_v52 = vunpack.c.l.b16 %v875_v43  ;;  %v895_v53 = vsel %vm248_vm1, %v894_v46, %v886_v44  ;;  %v898_v54 = vrot.slane %v889_v45, 5 }
 0x5fd   :  { %v892_v1 = vunpack.c.l.b16 %v876_v48  ;;  %v897_v2 = vsel %vm251_vm2, %v896_v50, %v895_v53  ;;  %v900_v3 = vrot.slane %v890_v49, 4 }
 0x5fe   :  { %v893_v4 = vunpack.c.l.b16 %v877_v51  ;;  %v899_v55 = vsel %vm254_vm3, %v898_v54, %v897_v2  ;;  %v902_v56 = vrot.slane %v891_v52, 3 }
 0x5ff   :  { %v901_v57 = vsel %vm257_vm4, %v900_v3, %v899_v55  ;;  %v904_v5 = vrot.slane %v892_v1, 2 }
 0x600   :  { %v903_v58 = vsel %vm260_vm5, %v902_v56, %v901_v57  ;;  %v906_v59 = vrot.slane %v893_v4, 1 }
 0x601   :  { %v905_v60 = vsel %vm263_vm6, %v904_v5, %v903_v58 }
 0x602   :  { %v907_v6 = vsel %vm266_vm7, %v906_v59, %v905_v60 }
 0x603   :  { %v908_v61 = vpack.c.b16 %v907_v6, %v907_v6 }
 0x605   :  { %1377 = vmatmul.mubr.bf16.vlgmr.msra.gmra.mrb[12].mxu0 %v908_v61 }
 0x6d8   :  { %v944_v11 = vpop.f32.mrb[12].mxu0 }
 0x6d9   :  { %v951_v8 = vrot.slane %v944_v11, 1  ;;  %v952_v12 = vrot.slane %v944_v11, 2  ;;  %v953_v13 = vrot.slane %v944_v11, 3  ;;  %v954_v14 = vrot.slane %v944_v11, 4  ;;  %v1378_v15 = vpop.f32.mrb[13].mxu0 }
 0x6da   :  { %v955_v17 = vrot.slane %v944_v11, 5  ;;  %v956_v18 = vrot.slane %v944_v11, 6  ;;  %v966_v19 = vadd.f32 %v944_v11, %v862_v62  ;;  %v947_v0 = vpop.f32.mrb[14].mxu0  ;;  %v957_v21 = vrot.slane %v944_v11, 7  ;;  %v993_v11 = vld [vmem:[#allocation3 + $0x1f] sm:$0x1] }
 0x6db   :  { %v967_v22 = vadd.f32 %v951_v8, %v863_v63  ;;  %v968_v23 = vadd.f32 %v952_v12, %v864_v7  ;;  %v969_v24 = vadd.f32 %v953_v13, %v865_v9  ;;  %v1379_v25 = vpop.f32.mrb[15].mxu0  ;;  %v970_v27 = vadd.f32 %v954_v14, %v866_v10  ;;  %v990_v7 = vld [vmem:[#allocation3 + $0x7] sm:$0x1]  ;;  %v991_v9 = vld [vmem:[#allocation3 + $0xf] sm:$0x1] }
 0x6dc   :  { %1514 = vtanh.f32 %v966_v19  ;;  %v971_v28 = vadd.f32 %v955_v17, %v867_v16  ;;  %v972_v29 = vadd.f32 %v956_v18, %v868_v20  ;;  %v973_v30 = vadd.f32 %v957_v21, %v869_v26  ;;  %v992_v10 = vld [vmem:[#allocation3 + $0x17] sm:$0x1]  ;;  %v994_v8 = vld [vmem:[#allocation3 + $0x27] sm:$0x1]  ;;  %v995_v18 = vld [vmem:[#allocation3 + $0x2f] sm:$0x1] }
 0x6dd   :  { %1516 = vtanh.f32 %v967_v22  ;;  %v996_v22 = vld [vmem:[#allocation3 + $0x37] sm:$0x1] }
 0x6de   :  { %1518 = vtanh.f32 %v968_v23 }
 0x6df   :  { %1520 = vtanh.f32 %v969_v24 }
 0x6e0   :  { %1522 = vtanh.f32 %v970_v27 }
 0x6e1   :  { %1524 = vtanh.f32 %v971_v28  ;;  %v997_v28 = vld [vmem:[#allocation3 + $0x3f] sm:$0x1] }
 0x6e2   :  { %1526 = vtanh.f32 %v972_v29 }
 0x6e3   :  { %1528 = vtanh.f32 %v973_v30 }
 0x6e6   :  { %v1515_v31 = vpop.eup %1514 }
 0x6e7   :  { %v1517_v32 = vpop.eup %1516  ;;  %982 = vst [vmem:[#allocation9 + $0x6] sm:$0x1] %v1515_v31  ;;  %v998_v34 = vpack.c.bf16 %v1515_v31, %v1515_v31 }
 0x6e8   :  { %v1519_v33 = vpop.eup %1518  ;;  %983 = vst [vmem:[#allocation9 + $0xe] sm:$0x1] %v1517_v32  ;;  %v999_v35 = vpack.c.bf16 %v1517_v32, %v1517_v32 }
 0x6e9   :  { %v1521_v36 = vpop.eup %1520  ;;  %984 = vst [vmem:[#allocation9 + $0x16] sm:$0x1] %v1519_v33  ;;  %v1000_v37 = vpack.c.bf16 %v1519_v33, %v1519_v33  ;;  %v1014_v46 = vunpack.c.l.b16 %v998_v34 }
 0x6ea   :  { %v1523_v38 = vpop.eup %1522  ;;  %985 = vst [vmem:[#allocation9 + $0x1e] sm:$0x1] %v1521_v36  ;;  %v1001_v39 = vpack.c.bf16 %v1521_v36, %v1521_v36  ;;  %v1015_v40 = vunpack.c.l.b16 %v999_v35 }
 0x6eb   :  { %v1525_v41 = vpop.eup %1524  ;;  %986 = vst [vmem:[#allocation9 + $0x26] sm:$0x1] %v1523_v38  ;;  %v1002_v42 = vpack.c.bf16 %v1523_v38, %v1523_v38  ;;  %v1016_v43 = vunpack.c.l.b16 %v1000_v37 }
 0x6ec   :  { %v1527_v44 = vpop.eup %1526  ;;  %987 = vst [vmem:[#allocation9 + $0x2e] sm:$0x1] %v1525_v41  ;;  %v1003_v45 = vpack.c.bf16 %v1525_v41, %v1525_v41  ;;  %v1017_v47 = vunpack.c.l.b16 %v1001_v39  ;;  %v1022_v48 = vrot.slane %v1015_v40, 7 }
 0x6ed   :  { %v1529_v49 = vpop.eup %1528  ;;  %988 = vst [vmem:[#allocation9 + $0x36] sm:$0x1] %v1527_v44  ;;  %v1004_v50 = vpack.c.bf16 %v1527_v44, %v1527_v44  ;;  %v1018_v51 = vunpack.c.l.b16 %v1002_v42  ;;  %v1024_v52 = vrot.slane %v1016_v43, 6 }
 0x6ee   :  { %989 = vst [vmem:[#allocation9 + $0x3e] sm:$0x1] %v1529_v49  ;;  %v1005_v53 = vpack.c.bf16 %v1529_v49, %v1529_v49  ;;  %v1019_v54 = vunpack.c.l.b16 %v1003_v45  ;;  %v1023_v1 = vsel %vm248_vm1, %v1022_v48, %v1014_v46  ;;  %v1026_v2 = vrot.slane %v1017_v47, 5 }
 0x6ef   :  { %v1020_v3 = vunpack.c.l.b16 %v1004_v50  ;;  %v1025_v4 = vsel %vm251_vm2, %v1024_v52, %v1023_v1  ;;  %v1028_v55 = vrot.slane %v1018_v51, 4 }
 0x6f0   :  { %v1021_v56 = vunpack.c.l.b16 %v1005_v53  ;;  %v1027_v57 = vsel %vm254_vm3, %v1026_v2, %v1025_v4  ;;  %v1030_v5 = vrot.slane %v1019_v54, 3 }
 0x6f1   :  { %v1029_v58 = vsel %vm257_vm4, %v1028_v55, %v1027_v57  ;;  %v1032_v59 = vrot.slane %v1020_v3, 2 }
 0x6f2   :  { %v1031_v60 = vsel %vm260_vm5, %v1030_v5, %v1029_v58  ;;  %v1034_v6 = vrot.slane %v1021_v56, 1 }
 0x6f3   :  { %v1033_v61 = vsel %vm263_vm6, %v1032_v59, %v1031_v60 }
 0x6f4   :  { %v1035_v62 = vsel %vm266_vm7, %v1034_v6, %v1033_v61 }
 0x6f5   :  { %v1036_v63 = vpack.c.b16 %v1035_v62, %v1035_v62 }
 0x6f7   :  { %1397 = vmatmul.mubr.bf16.vlgmr.msra.gmra.mrb[12].mxu1 %v1036_v63 }
 0x7ca   :  { %v1072_v12 = vpop.f32.mrb[12].mxu1 }
 0x7cb   :  { %v1079_v13 = vrot.slane %v1072_v12, 1  ;;  %v1080_v14 = vrot.slane %v1072_v12, 2  ;;  %v1081_v15 = vrot.slane %v1072_v12, 3  ;;  %v1082_v16 = vrot.slane %v1072_v12, 4  ;;  %v1398_v17 = vpop.f32.mrb[13].mxu1 }
 0x7cc   :  { %v1083_v19 = vrot.slane %v1072_v12, 5  ;;  %v1084_v0 = vrot.slane %v1072_v12, 6  ;;  %v1094_v20 = vadd.f32 %v1072_v12, %v990_v7  ;;  %v1075_v21 = vpop.f32.mrb[14].mxu1  ;;  %v1085_v23 = vrot.slane %v1072_v12, 7 }
 0x7cd   :  { %v1095_v24 = vadd.f32 %v1079_v13, %v991_v9  ;;  %v1096_v25 = vadd.f32 %v1080_v14, %v992_v10  ;;  %v1097_v26 = vadd.f32 %v1081_v15, %v993_v11  ;;  %v1399_v27 = vpop.f32.mrb[15].mxu1  ;;  %v1098_v29 = vadd.f32 %v1082_v16, %v994_v8 }
 0x7ce   :  { %1530 = vtanh.f32 %v1094_v20  ;;  %v1099_v30 = vadd.f32 %v1083_v19, %v995_v18  ;;  %v1100_v31 = vadd.f32 %v1084_v0, %v996_v22  ;;  %v1101_v32 = vadd.f32 %v1085_v23, %v997_v28 }
 0x7cf   :  { %1532 = vtanh.f32 %v1095_v24 }
 0x7d0   :  { %1534 = vtanh.f32 %v1096_v25 }
 0x7d1   :  { %1536 = vtanh.f32 %v1097_v26 }
 0x7d2   :  { %1538 = vtanh.f32 %v1098_v29 }
 0x7d3   :  { %1540 = vtanh.f32 %v1099_v30 }
 0x7d4   :  { %1542 = vtanh.f32 %v1100_v31 }
 0x7d5   :  { %1544 = vtanh.f32 %v1101_v32 }
 0x7d8   :  { %v1531_v33 = vpop.eup %1530 }
 0x7d9   :  { %v1533_v34 = vpop.eup %1532  ;;  %1110 = vst [vmem:[#allocation9 + $0x7] sm:$0x1] %v1531_v33 }
 0x7da   :  { %v1535_v35 = vpop.eup %1534  ;;  %1111 = vst [vmem:[#allocation9 + $0xf] sm:$0x1] %v1533_v34 }
 0x7db   :  { %v1537_v36 = vpop.eup %1536  ;;  %1112 = vst [vmem:[#allocation9 + $0x17] sm:$0x1] %v1535_v35 }
 0x7dc   :  { %v1539_v37 = vpop.eup %1538  ;;  %1113 = vst [vmem:[#allocation9 + $0x1f] sm:$0x1] %v1537_v36 }
 0x7dd   :  { %v1541_v38 = vpop.eup %1540  ;;  %1114 = vst [vmem:[#allocation9 + $0x27] sm:$0x1] %v1539_v37 }
 0x7de   :  { %v1543_v39 = vpop.eup %1542  ;;  %1115 = vst [vmem:[#allocation9 + $0x2f] sm:$0x1] %v1541_v38 }
 0x7df   :  { %v1545_v40 = vpop.eup %1544  ;;  %1116 = vst [vmem:[#allocation9 + $0x37] sm:$0x1] %v1543_v39 }
 0x7e0   :  { %1117 = vst [vmem:[#allocation9 + $0x3f] sm:$0x1] %v1545_v40 }
 0x7e1   :  { %1631 = shalt.err (!%p1628_p0)
}
 0x7e2   :  { %s1632_s27 = scalar_lea.hbm %s1936_s3, 1024 }
 0x7e3   :  { %p1633_p1 = scmp.ne.s32.totalorder %s1936_s3, %s1632_s27  ;;  %p1636_p2 = scmp.lt.u32.totalorder %s1632_s27, %s1936_s3 }
 0x7e5   :  { %p1638_p3 = pnand %p1636_p2, %p1633_p1 }
 0x7e7   :  { %1641 = shalt.err (!%p1638_p3)
}
 0x7e8   :  { %1153 = dma.vmem_to_hbm [thread:$0]  %s1148_s23, 1024, %s1936_s3, [#allocation5], %s1652_s1, %s1652_s1, %s1653_s9  }
 0x7e9   :  { %1646 = dma.done.wait [#allocation5], 1024  }
 0x7ea   :  { %1647 = vsyncadd [#allocation5], 4294966272 }
 0x7eb   :  { %1157 = vsyncpa [#allocation4], 1 }
 0x7ec   :  { %1158 = vsyncpa [#allocation7], 1 }
 0x7ed   :  { %1159 = vsyncpa [#allocation5], 1 }

</bundles_post_ra>
